<compile_context>
chip_gen: v6e
topology: v6e:2x2x1
jax: 0.10.0
libtpu: 0.0.40
codegen_flags: <defaults>
</compile_context>

<pallas_src>
import functools

import jax
import jax.numpy as jnp
from jax.experimental import pallas as pl
from jax.experimental.pallas import tpu as pltpu


def _round_up(n, m):
    return ((n + m - 1) // m) * m


# -----------------------------------------------------------------------------
# Fused kernel: batched input projection + unrolled LSTM recurrence + fused MLP
# -----------------------------------------------------------------------------
def _fused_kernel(x_ref, lstm_ref, mlp_ref, h0_ref, c0_ref,
                  out_ref, hT_ref, cT_ref):
    Bp, Hp = h0_ref.shape                 # batch padded to 8, hidden padded to 128
    TBp, Dp = x_ref.shape                 # time-major flattened, [T*Bp, Dp]
    T = TBp // Bp
    Wm = mlp_ref.shape[1]                 # fused-MLP lane width (>= 2H, >= A+1)

    # ---- LSTM params: one slab, static sublane-aligned slices -------------
    w_ih = lstm_ref[0:Dp, :]                        # [Dp, 4*Hp]
    w_hh = lstm_ref[Dp:Dp + Hp, :]                  # [Hp, 4*Hp]
    bias = lstm_ref[Dp + Hp:Dp + Hp + 1, :]         # [1, 4*Hp]

    # (1) One batched input projection for all timesteps (replaces T skinny
    #     matmuls and per-step bias broadcasts).
    gates_x = (jnp.dot(x_ref[...], w_ih, preferred_element_type=jnp.float32)
               + bias)                              # [T*Bp, 4*Hp]

    h = h0_ref[...]                                 # [Bp, Hp]
    c = c0_ref[...]
    hs = []

    # (2) Recurrence fully unrolled (T small & static): straight-line code,
    #     state carried in vregs.  Gate blocks are 128-lane aligned (kernel
    #     column order i|f|o|g), so every slice below is a whole-vreg pick --
    #     no cross-lane relayouts on the serial path.  The gates_x slice is
    #     sublane-aligned (Bp multiple of 8) and independent of h, so it
    #     overlaps with the previous step's matmul.
    for t in range(T):
        gx = gates_x[t * Bp:(t + 1) * Bp, :]
        gates = gx + jnp.dot(h, w_hh, preferred_element_type=jnp.float32)
        sig = jax.nn.sigmoid(gates[:, :3 * Hp])     # i|f|o in one EUP sweep
        i = sig[:, 0:Hp]
        f = sig[:, Hp:2 * Hp]
        o = sig[:, 2 * Hp:3 * Hp]
        g = jnp.tanh(gates[:, 3 * Hp:])
        c = f * c + i * g
        h = o * jnp.tanh(c)
        hs.append(h)

    hT_ref[...] = h                                  # dense, one-shot stores
    cT_ref[...] = c

    # (3) Features never leave VMEM: one aligned concat replaces T masked
    #     sub-sublane scratch stores.
    feat = jnp.concatenate(hs, axis=0)               # [T*Bp, Hp]

    # ---- fused action+value MLP: one slab, 3 matmuls, one dense store ------
    w1 = mlp_ref[0:Hp, :]                            # [Hp, Wm]
    b1 = mlp_ref[Hp:Hp + 1, :]
    w2 = mlp_ref[Hp + 8:Hp + 8 + Wm, :]              # [Wm, Wm] (block-diagonal)
    b2 = mlp_ref[Hp + 8 + Wm:Hp + 9 + Wm, :]
    w3 = mlp_ref[Hp + 16 + Wm:Hp + 16 + 2 * Wm, :]   # [Wm, Wm] (combined head)
    b3 = mlp_ref[Hp + 16 + 2 * Wm:Hp + 17 + 2 * Wm, :]

    h1 = jnp.maximum(
        jnp.dot(feat, w1, preferred_element_type=jnp.float32) + b1, 0.0)
    h2 = jnp.maximum(
        jnp.dot(h1, w2, preferred_element_type=jnp.float32) + b2, 0.0)
    out_ref[...] = (jnp.dot(h2, w3, preferred_element_type=jnp.float32)
                    + b3).astype(out_ref.dtype)


def fused_forward(x_tm_p, h0, c0, lstm_slab, mlp_slab):
    """x_tm_p: [T*Bp, Dp] time-major, batch/feature padded.
    Returns (out [T*Bp, Wm] with cols [0:A]=logits, col A=value; hT/cT [Bp,Hp])."""
    TBp, _ = x_tm_p.shape
    Bp, Hp = h0.shape
    Wm = mlp_slab.shape[1]

    def full(shape):
        return pl.BlockSpec(shape, lambda *_: (0,) * len(shape))

    return pl.pallas_call(
        _fused_kernel,
        out_shape=(
            jax.ShapeDtypeStruct((TBp, Wm), jnp.float32),
            jax.ShapeDtypeStruct((Bp, Hp), jnp.float32),
            jax.ShapeDtypeStruct((Bp, Hp), jnp.float32),
        ),
        grid_spec=pltpu.PrefetchScalarGridSpec(
            num_scalar_prefetch=0,
            grid=(1,),
            in_specs=[
                full(x_tm_p.shape),
                full(lstm_slab.shape),
                full(mlp_slab.shape),
                full(h0.shape),
                full(c0.shape),
            ],
            out_specs=[
                full((TBp, Wm)),
                full((Bp, Hp)),
                full((Bp, Hp)),
            ],
        ),
        compiler_params=pltpu.CompilerParams(
            dimension_semantics=("arbitrary",)),
        # NOTE: at large B*T, row-tile the gates_x precompute and the MLP
        # epilogue over a "parallel" grid axis (TILE ~512-2048) and set
        # vmem_limit_bytes explicitly so the fused layout also fits v7x's
        # 64 MiB VMEM; at these RL rollout shapes the single fused launch wins.
    )(x_tm_p, lstm_slab, mlp_slab, h0, c0)


# -----------------------------------------------------------------------------
# Host-side weight packing: 2 contiguous, aligned slabs (cuts 18 DMAs -> 5)
# -----------------------------------------------------------------------------
def _build_lstm_slab(lstm_p, H, Hp, Dp):
    """Rows: [0:Dp]=w_ih, [Dp:Dp+Hp]=w_hh, [Dp+Hp]=bias (row-padded to 8).
    Columns: 4 lane-aligned blocks of Hp in kernel gate order i|f|o|g
    (re-packed from the PyTorch i,f,g,o layout), zero-padded beyond H."""
    def expand(w, rows_out):
        r = w.shape[0]
        i, f, g, o = (w[:, k * H:(k + 1) * H] for k in range(4))
        return jnp.concatenate(
            [jnp.pad(blk, ((0, rows_out - r), (0, Hp - H)))
             for blk in (i, f, o, g)], axis=1)
    w_ih = expand(lstm_p["w_ih"], Dp)
    w_hh = expand(lstm_p["w_hh"], Hp)
    bias = expand(lstm_p["bias"], 8)
    return jnp.concatenate([w_ih, w_hh, bias], axis=0)      # [Dp+Hp+8, 4*Hp]


def _build_mlp_slab(action_p, value_p, H, Hp, Wm, A):
    """Fused action+value MLP: cols [0:H]=action path, [H:2H]=value path,
    head cols [0:A]=logits, col A=value; everything else zero-padded."""
    aw1, ab1, aw2, ab2, aw3, ab3 = action_p
    vw1, vb1, vw2, vb2, vw3, vb3 = value_p
    W1 = (jnp.zeros((Hp, Wm), jnp.float32)
          .at[:H, :H].set(aw1).at[:H, H:2 * H].set(vw1))
    b1 = (jnp.zeros((8, Wm), jnp.float32)
          .at[0, :H].set(ab1[0]).at[0, H:2 * H].set(vb1[0]))
    W2 = (jnp.zeros((Wm, Wm), jnp.float32)
          .at[:H, :H].set(aw2).at[H:2 * H, H:2 * H].set(vw2))
    b2 = (jnp.zeros((8, Wm), jnp.float32)
          .at[0, :H].set(ab2[0]).at[0, H:2 * H].set(vb2[0]))
    W3 = (jnp.zeros((Wm, Wm), jnp.float32)
          .at[:H, :A].set(aw3).at[H:2 * H, A:A + 1].set(vw3))
    b3 = (jnp.zeros((8, Wm), jnp.float32)
          .at[0, :A].set(ab3[0]).at[0, A:A + 1].set(vb3[0]))
    return jnp.concatenate([W1, b1, W2, b2, W3, b3], axis=0)  # [Hp+2*Wm+24, Wm]


# -----------------------------------------------------------------------------
# Parameter construction (deterministic; PyTorch-default-like uniform init)
# -----------------------------------------------------------------------------
def _uniform(key, shape, fan_in):
    bound = 1.0 / jnp.sqrt(jnp.float32(fan_in))
    return jax.random.uniform(key, shape, jnp.float32, -bound, bound)


def make_params(key, d_in, hidden, num_outputs):
    ks = jax.random.split(key, 16)
    # LSTM (PyTorch gate order i, f, g, o); weights stored transposed: [in, 4H]
    w_ih = _uniform(ks[0], (d_in, 4 * hidden), hidden)
    w_hh = _uniform(ks[1], (hidden, 4 * hidden), hidden)
    b_ih = _uniform(ks[2], (1, 4 * hidden), hidden)
    b_hh = _uniform(ks[3], (1, 4 * hidden), hidden)
    lstm = dict(w_ih=w_ih, w_hh=w_hh, bias=b_ih + b_hh)

    def branch(keys, out_dim):
        w1 = _uniform(keys[0], (hidden, hidden), hidden)
        b1 = _uniform(keys[1], (1, hidden), hidden)
        w2 = _uniform(keys[2], (hidden, hidden), hidden)
        b2 = _uniform(keys[3], (1, hidden), hidden)
        w3 = _uniform(keys[4], (hidden, out_dim), hidden)
        b3 = _uniform(keys[5], (1, out_dim), hidden)
        return (w1, b1, w2, b2, w3, b3)

    action = branch(ks[4:10], num_outputs)
    value = branch(ks[10:16], 1)
    return lstm, action, value


# -----------------------------------------------------------------------------
# Full NoGradRNNModel forward (forward -> forward_rnn -> value_function)
# -----------------------------------------------------------------------------
@functools.partial(jax.jit, static_argnames=("num_actions", "max_seq_len"))
def nograd_rnn_forward(obs, prev_action, prev_reward, dones,
                       h_state, c_state, lstm_p, action_p, value_p,
                       *, num_actions, max_seq_len):
    """Flat inputs are [B*T, ...] like RLlib's batch; returns
    (logits [B*T, num_outputs], value [B*T], [h [B,1,H], c [B,1,H]])."""
    BT = obs.shape[0]
    T = max_seq_len
    B = BT // T
    H = h_state.shape[-1]
    A = num_actions

    # add_time_dimension (batch-major) + build memory_input concat features.
    pa_onehot = jax.nn.one_hot(prev_action, A, dtype=jnp.float32)
    x = jnp.concatenate(
        [obs, pa_onehot, prev_reward[:, None], dones[:, None]], axis=-1)
    D_in = x.shape[-1]

    # Kernel padding: lane-aligned gates (Hp), sublane-aligned batch (Bp),
    # feature rows to 8 (Dp), fused-MLP lane width (Wm).
    Hp = _round_up(H, 128)
    Bp = _round_up(B, 8)
    Dp = _round_up(D_in, 8)
    Wm = _round_up(max(2 * H, A + 1), 128)

    # Time-major flatten + zero padding (tiny copies; the wide [*,Hp] features
    # never leave VMEM inside the fused kernel).
    x_tm = jnp.transpose(x.reshape(B, T, D_in), (1, 0, 2))          # [T, B, D]
    x_tm_p = jnp.pad(
        x_tm, ((0, 0), (0, Bp - B), (0, Dp - D_in))).reshape(T * Bp, Dp)

    # state[i] is [B, 1, H] in RLlib -> [B, H], zero-padded (padded lanes/rows
    # stay exactly zero through the recurrence thanks to zero-padded weights).
    h0 = jnp.pad(h_state.reshape(B, H), ((0, Bp - B), (0, Hp - H)))
    c0 = jnp.pad(c_state.reshape(B, H), ((0, Bp - B), (0, Hp - H)))

    lstm_slab = _build_lstm_slab(lstm_p, H, Hp, Dp)
    mlp_slab = _build_mlp_slab(action_p, value_p, H, Hp, Wm, A)

    out_p, hT_p, cT_p = fused_forward(x_tm_p, h0, c0, lstm_slab, mlp_slab)

    # Reorder/split only the tiny outputs (time-major padded -> batch-major),
    # matching torch.reshape(output, [-1, num_outputs]) / value_function().
    out = jnp.transpose(
        out_p.reshape(T, Bp, Wm)[:, :B, :], (1, 0, 2)).reshape(BT, Wm)
    logits = out[:, :A]
    value = out[:, A]

    hT = hT_p[:B, :H]
    cT = cT_p[:B, :H]
    new_state = [hT[:, None, :], cT[:, None, :]]                 # back to [B,1,H]
    return logits, value, new_state


# -----------------------------------------------------------------------------
# Pure-JAX reference (for correctness check against the fused kernel)
# -----------------------------------------------------------------------------
def reference_forward(obs, prev_action, prev_reward, dones, h_state, c_state,
                      lstm_p, action_p, value_p, *, num_actions, max_seq_len):
    P = jax.lax.Precision.HIGHEST
    BT = obs.shape[0]
    T = max_seq_len
    B = BT // T
    H = h_state.shape[-1]
    pa = jax.nn.one_hot(prev_action, num_actions, dtype=jnp.float32)
    x = jnp.concatenate([obs, pa, prev_reward[:, None], dones[:, None]], -1)
    x_tm = jnp.transpose(x.reshape(B, T, -1), (1, 0, 2))            # [T, B, D]

    def step(carry, x_t):
        h, c = carry
        gates = (jnp.dot(x_t, lstm_p["w_ih"], precision=P)
                 + jnp.dot(h, lstm_p["w_hh"], precision=P) + lstm_p["bias"])
        i = jax.nn.sigmoid(gates[:, 0 * H:1 * H])
        f = jax.nn.sigmoid(gates[:, 1 * H:2 * H])
        g = jnp.tanh(gates[:, 2 * H:3 * H])
        o = jax.nn.sigmoid(gates[:, 3 * H:4 * H])
        c = f * c + i * g
        h = o * jnp.tanh(c)
        return (h, c), h

    h0 = h_state.reshape(B, H)
    c0 = c_state.reshape(B, H)
    (hT, cT), feat_tm = jax.lax.scan(step, (h0, c0), x_tm)
    feat = jnp.transpose(feat_tm, (1, 0, 2)).reshape(BT, H)

    def mlp(p):
        w1, b1, w2, b2, w3, b3 = p
        h1 = jnp.maximum(jnp.dot(feat, w1, precision=P) + b1, 0.0)
        h2 = jnp.maximum(jnp.dot(h1, w2, precision=P) + b2, 0.0)
        return jnp.dot(h2, w3, precision=P) + b3

    logits = mlp(action_p)
    value = mlp(value_p).reshape(-1)
    return logits, value, [hT[:, None, :], cT[:, None, :]]


if __name__ == "__main__":
    B, T = 2, 8
    OBS_DIM = 10
    NUM_ACTIONS = 4          # num_outputs
    HIDDEN = 32              # lstm_state_size
    D_IN = OBS_DIM + NUM_ACTIONS + 2

    key = jax.random.PRNGKey(0)
    k_param, k_obs, k_act, k_rew, k_done = jax.random.split(key, 5)

    lstm_p, action_p, value_p = make_params(k_param, D_IN, HIDDEN, NUM_ACTIONS)

    obs = jax.random.normal(k_obs, (B * T, OBS_DIM), jnp.float32)
    prev_action = jax.random.randint(k_act, (B * T,), 0, NUM_ACTIONS)
    prev_reward = jax.random.normal(k_rew, (B * T,), jnp.float32)
    dones = (jax.random.uniform(k_done, (B * T,)) < 0.1).astype(jnp.float32)

    h_state = jnp.zeros((B, 1, HIDDEN), jnp.float32)   # get_initial_state()
    c_state = jnp.zeros((B, 1, HIDDEN), jnp.float32)

    logits, value, new_state = nograd_rnn_forward(
        obs, prev_action, prev_reward, dones, h_state, c_state,
        lstm_p, action_p, value_p,
        num_actions=NUM_ACTIONS, max_seq_len=T)
    jax.block_until_ready((logits, value, new_state))

    assert logits.shape == (B * T, NUM_ACTIONS)
    assert value.shape == (B * T,)
    assert new_state[0].shape == (B, 1, HIDDEN)
    assert new_state[1].shape == (B, 1, HIDDEN)

    # Correctness check vs. pure-JAX reference (reference uses HIGHEST
    # precision; kernel uses default MXU f32 passes -> 2e-3 tolerance).
    ref_logits, ref_value, ref_state = reference_forward(
        obs, prev_action, prev_reward, dones, h_state, c_state,
        lstm_p, action_p, value_p,
        num_actions=NUM_ACTIONS, max_seq_len=T)
    assert jnp.allclose(logits, ref_logits, atol=2e-3, rtol=2e-3)
    assert jnp.allclose(value, ref_value, atol=2e-3, rtol=2e-3)
    assert jnp.allclose(new_state[0], ref_state[0], atol=2e-3, rtol=2e-3)
    assert jnp.allclose(new_state[1], ref_state[1], atol=2e-3, rtol=2e-3)

    print("KERNEL_OK")
</pallas_src>

<mosaic_0001>
module attributes {stable_mosaic.version = 11 : i64} {
  func.func @_fused_kernel(%arg0: i32, %arg1: memref<64x16xf32, #tpu.memory_space<vmem>>, %arg2: memref<152x512xf32, #tpu.memory_space<vmem>>, %arg3: memref<408x128xf32, #tpu.memory_space<vmem>>, %arg4: memref<8x128xf32, #tpu.memory_space<vmem>>, %arg5: memref<8x128xf32, #tpu.memory_space<vmem>>, %arg6: memref<64x128xf32, #tpu.memory_space<vmem>>, %arg7: memref<8x128xf32, #tpu.memory_space<vmem>>, %arg8: memref<8x128xf32, #tpu.memory_space<vmem>>) attributes {dimension_semantics = [#tpu.dimension_semantics<arbitrary>], iteration_bounds = array<i64: 1>, scalar_prefetch = 0 : i64, scratch_operands = 0 : i64, tpu.core_type = #tpu.core_type<tc>, window_params = [{pipeline_mode = #tpu.pipeline_mode<synchronous>, transform_indices = @transform_0, window_bounds = array<i64: 64, 16>}, {pipeline_mode = #tpu.pipeline_mode<synchronous>, transform_indices = @transform_1, window_bounds = array<i64: 152, 512>}, {pipeline_mode = #tpu.pipeline_mode<synchronous>, transform_indices = @transform_2, window_bounds = array<i64: 408, 128>}, {pipeline_mode = #tpu.pipeline_mode<synchronous>, transform_indices = @transform_3, window_bounds = array<i64: 8, 128>}, {pipeline_mode = #tpu.pipeline_mode<synchronous>, transform_indices = @transform_4, window_bounds = array<i64: 8, 128>}, {pipeline_mode = #tpu.pipeline_mode<synchronous>, transform_indices = @transform_5, window_bounds = array<i64: 64, 128>}, {pipeline_mode = #tpu.pipeline_mode<synchronous>, transform_indices = @transform_6, window_bounds = array<i64: 8, 128>}, {pipeline_mode = #tpu.pipeline_mode<synchronous>, transform_indices = @transform_7, window_bounds = array<i64: 8, 128>}]} {
    %c0 = arith.constant 0 : index
    %c0_0 = arith.constant 0 : index
    %0 = vector.load %arg2[%c0, %c0_0] : memref<152x512xf32, #tpu.memory_space<vmem>>, vector<16x512xf32>
    %c16 = arith.constant 16 : index
    %c0_1 = arith.constant 0 : index
    %1 = vector.load %arg2[%c16, %c0_1] : memref<152x512xf32, #tpu.memory_space<vmem>>, vector<128x512xf32>
    %c144 = arith.constant 144 : index
    %c0_2 = arith.constant 0 : index
    %2 = vector.load %arg2[%c144, %c0_2] : memref<152x512xf32, #tpu.memory_space<vmem>>, vector<1x512xf32>
    %c0_3 = arith.constant 0 : index
    %c0_4 = arith.constant 0 : index
    %3 = vector.load %arg1[%c0_3, %c0_4] : memref<64x16xf32, #tpu.memory_space<vmem>>, vector<64x16xf32>
    %cst = arith.constant dense<0.000000e+00> : vector<64x512xf32>
    %4 = tpu.matmul %3, %0, %cst {dimension_numbers = #tpu.dot_dimension_numbers<[1], [0], [0], [1], [0, 0, 1, 1], [], []>} : vector<64x16xf32>, vector<16x512xf32>, vector<64x512xf32> -> vector<64x512xf32>
    %5 = vector.broadcast %2 : vector<1x512xf32> to vector<64x512xf32>
    %6 = arith.addf %4, %5 : vector<64x512xf32>
    %c0_5 = arith.constant 0 : index
    %c0_6 = arith.constant 0 : index
    %7 = vector.load %arg4[%c0_5, %c0_6] : memref<8x128xf32, #tpu.memory_space<vmem>>, vector<8x128xf32>
    %c0_7 = arith.constant 0 : index
    %c0_8 = arith.constant 0 : index
    %8 = vector.load %arg5[%c0_7, %c0_8] : memref<8x128xf32, #tpu.memory_space<vmem>>, vector<8x128xf32>
    %9 = vector.extract_strided_slice %6 {offsets = [0, 0], sizes = [8, 512], strides = [1, 1]} : vector<64x512xf32> to vector<8x512xf32>
    %cst_9 = arith.constant dense<0.000000e+00> : vector<8x512xf32>
    %10 = tpu.matmul %7, %1, %cst_9 {dimension_numbers = #tpu.dot_dimension_numbers<[1], [0], [0], [1], [0, 0, 1, 1], [], []>} : vector<8x128xf32>, vector<128x512xf32>, vector<8x512xf32> -> vector<8x512xf32>
    %11 = arith.addf %9, %10 : vector<8x512xf32>
    %12 = vector.extract_strided_slice %11 {offsets = [0, 0], sizes = [8, 384], strides = [1, 1]} : vector<8x512xf32> to vector<8x384xf32>
    %13 = arith.negf %12 : vector<8x384xf32>
    %14 = math.exp %13 : vector<8x384xf32>
    %cst_10 = arith.constant 1.000000e+00 : f32
    %15 = vector.broadcast %cst_10 : f32 to vector<8x384xf32>
    %16 = arith.addf %15, %14 : vector<8x384xf32>
    %17 = arith.divf %15, %16 : vector<8x384xf32>
    %18 = vector.extract_strided_slice %17 {offsets = [0, 0], sizes = [8, 128], strides = [1, 1]} : vector<8x384xf32> to vector<8x128xf32>
    %19 = vector.extract_strided_slice %17 {offsets = [0, 128], sizes = [8, 128], strides = [1, 1]} : vector<8x384xf32> to vector<8x128xf32>
    %20 = vector.extract_strided_slice %17 {offsets = [0, 256], sizes = [8, 128], strides = [1, 1]} : vector<8x384xf32> to vector<8x128xf32>
    %21 = vector.extract_strided_slice %11 {offsets = [0, 384], sizes = [8, 128], strides = [1, 1]} : vector<8x512xf32> to vector<8x128xf32>
    %22 = math.tanh %21 : vector<8x128xf32>
    %23 = arith.mulf %19, %8 : vector<8x128xf32>
    %24 = arith.mulf %18, %22 : vector<8x128xf32>
    %25 = arith.addf %23, %24 : vector<8x128xf32>
    %26 = math.tanh %25 : vector<8x128xf32>
    %27 = arith.mulf %20, %26 : vector<8x128xf32>
    %28 = vector.extract_strided_slice %6 {offsets = [8, 0], sizes = [8, 512], strides = [1, 1]} : vector<64x512xf32> to vector<8x512xf32>
    %cst_11 = arith.constant dense<0.000000e+00> : vector<8x512xf32>
    %29 = tpu.matmul %27, %1, %cst_11 {dimension_numbers = #tpu.dot_dimension_numbers<[1], [0], [0], [1], [0, 0, 1, 1], [], []>} : vector<8x128xf32>, vector<128x512xf32>, vector<8x512xf32> -> vector<8x512xf32>
    %30 = arith.addf %28, %29 : vector<8x512xf32>
    %31 = vector.extract_strided_slice %30 {offsets = [0, 0], sizes = [8, 384], strides = [1, 1]} : vector<8x512xf32> to vector<8x384xf32>
    %32 = arith.negf %31 : vector<8x384xf32>
    %33 = math.exp %32 : vector<8x384xf32>
    %cst_12 = arith.constant 1.000000e+00 : f32
    %34 = vector.broadcast %cst_12 : f32 to vector<8x384xf32>
    %35 = arith.addf %34, %33 : vector<8x384xf32>
    %36 = arith.divf %34, %35 : vector<8x384xf32>
    %37 = vector.extract_strided_slice %36 {offsets = [0, 0], sizes = [8, 128], strides = [1, 1]} : vector<8x384xf32> to vector<8x128xf32>
    %38 = vector.extract_strided_slice %36 {offsets = [0, 128], sizes = [8, 128], strides = [1, 1]} : vector<8x384xf32> to vector<8x128xf32>
    %39 = vector.extract_strided_slice %36 {offsets = [0, 256], sizes = [8, 128], strides = [1, 1]} : vector<8x384xf32> to vector<8x128xf32>
    %40 = vector.extract_strided_slice %30 {offsets = [0, 384], sizes = [8, 128], strides = [1, 1]} : vector<8x512xf32> to vector<8x128xf32>
    %41 = math.tanh %40 : vector<8x128xf32>
    %42 = arith.mulf %38, %25 : vector<8x128xf32>
    %43 = arith.mulf %37, %41 : vector<8x128xf32>
    %44 = arith.addf %42, %43 : vector<8x128xf32>
    %45 = math.tanh %44 : vector<8x128xf32>
    %46 = arith.mulf %39, %45 : vector<8x128xf32>
    %47 = vector.extract_strided_slice %6 {offsets = [16, 0], sizes = [8, 512], strides = [1, 1]} : vector<64x512xf32> to vector<8x512xf32>
    %cst_13 = arith.constant dense<0.000000e+00> : vector<8x512xf32>
    %48 = tpu.matmul %46, %1, %cst_13 {dimension_numbers = #tpu.dot_dimension_numbers<[1], [0], [0], [1], [0, 0, 1, 1], [], []>} : vector<8x128xf32>, vector<128x512xf32>, vector<8x512xf32> -> vector<8x512xf32>
    %49 = arith.addf %47, %48 : vector<8x512xf32>
    %50 = vector.extract_strided_slice %49 {offsets = [0, 0], sizes = [8, 384], strides = [1, 1]} : vector<8x512xf32> to vector<8x384xf32>
    %51 = arith.negf %50 : vector<8x384xf32>
    %52 = math.exp %51 : vector<8x384xf32>
    %cst_14 = arith.constant 1.000000e+00 : f32
    %53 = vector.broadcast %cst_14 : f32 to vector<8x384xf32>
    %54 = arith.addf %53, %52 : vector<8x384xf32>
    %55 = arith.divf %53, %54 : vector<8x384xf32>
    %56 = vector.extract_strided_slice %55 {offsets = [0, 0], sizes = [8, 128], strides = [1, 1]} : vector<8x384xf32> to vector<8x128xf32>
    %57 = vector.extract_strided_slice %55 {offsets = [0, 128], sizes = [8, 128], strides = [1, 1]} : vector<8x384xf32> to vector<8x128xf32>
    %58 = vector.extract_strided_slice %55 {offsets = [0, 256], sizes = [8, 128], strides = [1, 1]} : vector<8x384xf32> to vector<8x128xf32>
    %59 = vector.extract_strided_slice %49 {offsets = [0, 384], sizes = [8, 128], strides = [1, 1]} : vector<8x512xf32> to vector<8x128xf32>
    %60 = math.tanh %59 : vector<8x128xf32>
    %61 = arith.mulf %57, %44 : vector<8x128xf32>
    %62 = arith.mulf %56, %60 : vector<8x128xf32>
    %63 = arith.addf %61, %62 : vector<8x128xf32>
    %64 = math.tanh %63 : vector<8x128xf32>
    %65 = arith.mulf %58, %64 : vector<8x128xf32>
    %66 = vector.extract_strided_slice %6 {offsets = [24, 0], sizes = [8, 512], strides = [1, 1]} : vector<64x512xf32> to vector<8x512xf32>
    %cst_15 = arith.constant dense<0.000000e+00> : vector<8x512xf32>
    %67 = tpu.matmul %65, %1, %cst_15 {dimension_numbers = #tpu.dot_dimension_numbers<[1], [0], [0], [1], [0, 0, 1, 1], [], []>} : vector<8x128xf32>, vector<128x512xf32>, vector<8x512xf32> -> vector<8x512xf32>
    %68 = arith.addf %66, %67 : vector<8x512xf32>
    %69 = vector.extract_strided_slice %68 {offsets = [0, 0], sizes = [8, 384], strides = [1, 1]} : vector<8x512xf32> to vector<8x384xf32>
    %70 = arith.negf %69 : vector<8x384xf32>
    %71 = math.exp %70 : vector<8x384xf32>
    %cst_16 = arith.constant 1.000000e+00 : f32
    %72 = vector.broadcast %cst_16 : f32 to vector<8x384xf32>
    %73 = arith.addf %72, %71 : vector<8x384xf32>
    %74 = arith.divf %72, %73 : vector<8x384xf32>
    %75 = vector.extract_strided_slice %74 {offsets = [0, 0], sizes = [8, 128], strides = [1, 1]} : vector<8x384xf32> to vector<8x128xf32>
    %76 = vector.extract_strided_slice %74 {offsets = [0, 128], sizes = [8, 128], strides = [1, 1]} : vector<8x384xf32> to vector<8x128xf32>
    %77 = vector.extract_strided_slice %74 {offsets = [0, 256], sizes = [8, 128], strides = [1, 1]} : vector<8x384xf32> to vector<8x128xf32>
    %78 = vector.extract_strided_slice %68 {offsets = [0, 384], sizes = [8, 128], strides = [1, 1]} : vector<8x512xf32> to vector<8x128xf32>
    %79 = math.tanh %78 : vector<8x128xf32>
    %80 = arith.mulf %76, %63 : vector<8x128xf32>
    %81 = arith.mulf %75, %79 : vector<8x128xf32>
    %82 = arith.addf %80, %81 : vector<8x128xf32>
    %83 = math.tanh %82 : vector<8x128xf32>
    %84 = arith.mulf %77, %83 : vector<8x128xf32>
    %85 = vector.extract_strided_slice %6 {offsets = [32, 0], sizes = [8, 512], strides = [1, 1]} : vector<64x512xf32> to vector<8x512xf32>
    %cst_17 = arith.constant dense<0.000000e+00> : vector<8x512xf32>
    %86 = tpu.matmul %84, %1, %cst_17 {dimension_numbers = #tpu.dot_dimension_numbers<[1], [0], [0], [1], [0, 0, 1, 1], [], []>} : vector<8x128xf32>, vector<128x512xf32>, vector<8x512xf32> -> vector<8x512xf32>
    %87 = arith.addf %85, %86 : vector<8x512xf32>
    %88 = vector.extract_strided_slice %87 {offsets = [0, 0], sizes = [8, 384], strides = [1, 1]} : vector<8x512xf32> to vector<8x384xf32>
    %89 = arith.negf %88 : vector<8x384xf32>
    %90 = math.exp %89 : vector<8x384xf32>
    %cst_18 = arith.constant 1.000000e+00 : f32
    %91 = vector.broadcast %cst_18 : f32 to vector<8x384xf32>
    %92 = arith.addf %91, %90 : vector<8x384xf32>
    %93 = arith.divf %91, %92 : vector<8x384xf32>
    %94 = vector.extract_strided_slice %93 {offsets = [0, 0], sizes = [8, 128], strides = [1, 1]} : vector<8x384xf32> to vector<8x128xf32>
    %95 = vector.extract_strided_slice %93 {offsets = [0, 128], sizes = [8, 128], strides = [1, 1]} : vector<8x384xf32> to vector<8x128xf32>
    %96 = vector.extract_strided_slice %93 {offsets = [0, 256], sizes = [8, 128], strides = [1, 1]} : vector<8x384xf32> to vector<8x128xf32>
    %97 = vector.extract_strided_slice %87 {offsets = [0, 384], sizes = [8, 128], strides = [1, 1]} : vector<8x512xf32> to vector<8x128xf32>
    %98 = math.tanh %97 : vector<8x128xf32>
    %99 = arith.mulf %95, %82 : vector<8x128xf32>
    %100 = arith.mulf %94, %98 : vector<8x128xf32>
    %101 = arith.addf %99, %100 : vector<8x128xf32>
    %102 = math.tanh %101 : vector<8x128xf32>
    %103 = arith.mulf %96, %102 : vector<8x128xf32>
    %104 = vector.extract_strided_slice %6 {offsets = [40, 0], sizes = [8, 512], strides = [1, 1]} : vector<64x512xf32> to vector<8x512xf32>
    %cst_19 = arith.constant dense<0.000000e+00> : vector<8x512xf32>
    %105 = tpu.matmul %103, %1, %cst_19 {dimension_numbers = #tpu.dot_dimension_numbers<[1], [0], [0], [1], [0, 0, 1, 1], [], []>} : vector<8x128xf32>, vector<128x512xf32>, vector<8x512xf32> -> vector<8x512xf32>
    %106 = arith.addf %104, %105 : vector<8x512xf32>
    %107 = vector.extract_strided_slice %106 {offsets = [0, 0], sizes = [8, 384], strides = [1, 1]} : vector<8x512xf32> to vector<8x384xf32>
    %108 = arith.negf %107 : vector<8x384xf32>
    %109 = math.exp %108 : vector<8x384xf32>
    %cst_20 = arith.constant 1.000000e+00 : f32
    %110 = vector.broadcast %cst_20 : f32 to vector<8x384xf32>
    %111 = arith.addf %110, %109 : vector<8x384xf32>
    %112 = arith.divf %110, %111 : vector<8x384xf32>
    %113 = vector.extract_strided_slice %112 {offsets = [0, 0], sizes = [8, 128], strides = [1, 1]} : vector<8x384xf32> to vector<8x128xf32>
    %114 = vector.extract_strided_slice %112 {offsets = [0, 128], sizes = [8, 128], strides = [1, 1]} : vector<8x384xf32> to vector<8x128xf32>
    %115 = vector.extract_strided_slice %112 {offsets = [0, 256], sizes = [8, 128], strides = [1, 1]} : vector<8x384xf32> to vector<8x128xf32>
    %116 = vector.extract_strided_slice %106 {offsets = [0, 384], sizes = [8, 128], strides = [1, 1]} : vector<8x512xf32> to vector<8x128xf32>
    %117 = math.tanh %116 : vector<8x128xf32>
    %118 = arith.mulf %114, %101 : vector<8x128xf32>
    %119 = arith.mulf %113, %117 : vector<8x128xf32>
    %120 = arith.addf %118, %119 : vector<8x128xf32>
    %121 = math.tanh %120 : vector<8x128xf32>
    %122 = arith.mulf %115, %121 : vector<8x128xf32>
    %123 = vector.extract_strided_slice %6 {offsets = [48, 0], sizes = [8, 512], strides = [1, 1]} : vector<64x512xf32> to vector<8x512xf32>
    %cst_21 = arith.constant dense<0.000000e+00> : vector<8x512xf32>
    %124 = tpu.matmul %122, %1, %cst_21 {dimension_numbers = #tpu.dot_dimension_numbers<[1], [0], [0], [1], [0, 0, 1, 1], [], []>} : vector<8x128xf32>, vector<128x512xf32>, vector<8x512xf32> -> vector<8x512xf32>
    %125 = arith.addf %123, %124 : vector<8x512xf32>
    %126 = vector.extract_strided_slice %125 {offsets = [0, 0], sizes = [8, 384], strides = [1, 1]} : vector<8x512xf32> to vector<8x384xf32>
    %127 = arith.negf %126 : vector<8x384xf32>
    %128 = math.exp %127 : vector<8x384xf32>
    %cst_22 = arith.constant 1.000000e+00 : f32
    %129 = vector.broadcast %cst_22 : f32 to vector<8x384xf32>
    %130 = arith.addf %129, %128 : vector<8x384xf32>
    %131 = arith.divf %129, %130 : vector<8x384xf32>
    %132 = vector.extract_strided_slice %131 {offsets = [0, 0], sizes = [8, 128], strides = [1, 1]} : vector<8x384xf32> to vector<8x128xf32>
    %133 = vector.extract_strided_slice %131 {offsets = [0, 128], sizes = [8, 128], strides = [1, 1]} : vector<8x384xf32> to vector<8x128xf32>
    %134 = vector.extract_strided_slice %131 {offsets = [0, 256], sizes = [8, 128], strides = [1, 1]} : vector<8x384xf32> to vector<8x128xf32>
    %135 = vector.extract_strided_slice %125 {offsets = [0, 384], sizes = [8, 128], strides = [1, 1]} : vector<8x512xf32> to vector<8x128xf32>
    %136 = math.tanh %135 : vector<8x128xf32>
    %137 = arith.mulf %133, %120 : vector<8x128xf32>
    %138 = arith.mulf %132, %136 : vector<8x128xf32>
    %139 = arith.addf %137, %138 : vector<8x128xf32>
    %140 = math.tanh %139 : vector<8x128xf32>
    %141 = arith.mulf %134, %140 : vector<8x128xf32>
    %142 = vector.extract_strided_slice %6 {offsets = [56, 0], sizes = [8, 512], strides = [1, 1]} : vector<64x512xf32> to vector<8x512xf32>
    %cst_23 = arith.constant dense<0.000000e+00> : vector<8x512xf32>
    %143 = tpu.matmul %141, %1, %cst_23 {dimension_numbers = #tpu.dot_dimension_numbers<[1], [0], [0], [1], [0, 0, 1, 1], [], []>} : vector<8x128xf32>, vector<128x512xf32>, vector<8x512xf32> -> vector<8x512xf32>
    %144 = arith.addf %142, %143 : vector<8x512xf32>
    %145 = vector.extract_strided_slice %144 {offsets = [0, 0], sizes = [8, 384], strides = [1, 1]} : vector<8x512xf32> to vector<8x384xf32>
    %146 = arith.negf %145 : vector<8x384xf32>
    %147 = math.exp %146 : vector<8x384xf32>
    %cst_24 = arith.constant 1.000000e+00 : f32
    %148 = vector.broadcast %cst_24 : f32 to vector<8x384xf32>
    %149 = arith.addf %148, %147 : vector<8x384xf32>
    %150 = arith.divf %148, %149 : vector<8x384xf32>
    %151 = vector.extract_strided_slice %150 {offsets = [0, 0], sizes = [8, 128], strides = [1, 1]} : vector<8x384xf32> to vector<8x128xf32>
    %152 = vector.extract_strided_slice %150 {offsets = [0, 128], sizes = [8, 128], strides = [1, 1]} : vector<8x384xf32> to vector<8x128xf32>
    %153 = vector.extract_strided_slice %150 {offsets = [0, 256], sizes = [8, 128], strides = [1, 1]} : vector<8x384xf32> to vector<8x128xf32>
    %154 = vector.extract_strided_slice %144 {offsets = [0, 384], sizes = [8, 128], strides = [1, 1]} : vector<8x512xf32> to vector<8x128xf32>
    %155 = math.tanh %154 : vector<8x128xf32>
    %156 = arith.mulf %152, %139 : vector<8x128xf32>
    %157 = arith.mulf %151, %155 : vector<8x128xf32>
    %158 = arith.addf %156, %157 : vector<8x128xf32>
    %159 = math.tanh %158 : vector<8x128xf32>
    %160 = arith.mulf %153, %159 : vector<8x128xf32>
    %c0_25 = arith.constant 0 : index
    %c0_26 = arith.constant 0 : index
    %161 = vector.load %arg7[%c0_25, %c0_26] : memref<8x128xf32, #tpu.memory_space<vmem>>, vector<8x128xf32>
    tpu.vector_store %arg7[%c0_25, %c0_26], %160 {strides = array<i32>} : memref<8x128xf32, #tpu.memory_space<vmem>>, vector<8x128xf32>,
    %c0_27 = arith.constant 0 : index
    %c0_28 = arith.constant 0 : index
    %162 = vector.load %arg8[%c0_27, %c0_28] : memref<8x128xf32, #tpu.memory_space<vmem>>, vector<8x128xf32>
    tpu.vector_store %arg8[%c0_27, %c0_28], %158 {strides = array<i32>} : memref<8x128xf32, #tpu.memory_space<vmem>>, vector<8x128xf32>,
    %163 = tpu.concatenate %27, %46, %65, %84, %103, %122, %141, %160 in 0 : vector<8x128xf32>, vector<8x128xf32>, vector<8x128xf32>, vector<8x128xf32>, vector<8x128xf32>, vector<8x128xf32>, vector<8x128xf32>, vector<8x128xf32> -> vector<64x128xf32>
    %c0_29 = arith.constant 0 : index
    %c0_30 = arith.constant 0 : index
    %164 = vector.load %arg3[%c0_29, %c0_30] : memref<408x128xf32, #tpu.memory_space<vmem>>, vector<128x128xf32>
    %c128 = arith.constant 128 : index
    %c0_31 = arith.constant 0 : index
    %165 = vector.load %arg3[%c128, %c0_31] : memref<408x128xf32, #tpu.memory_space<vmem>>, vector<1x128xf32>
    %c136 = arith.constant 136 : index
    %c0_32 = arith.constant 0 : index
    %166 = vector.load %arg3[%c136, %c0_32] : memref<408x128xf32, #tpu.memory_space<vmem>>, vector<128x128xf32>
    %c264 = arith.constant 264 : index
    %c0_33 = arith.constant 0 : index
    %167 = vector.load %arg3[%c264, %c0_33] : memref<408x128xf32, #tpu.memory_space<vmem>>, vector<1x128xf32>
    %c272 = arith.constant 272 : index
    %c0_34 = arith.constant 0 : index
    %168 = vector.load %arg3[%c272, %c0_34] : memref<408x128xf32, #tpu.memory_space<vmem>>, vector<128x128xf32>
    %c400 = arith.constant 400 : index
    %c0_35 = arith.constant 0 : index
    %169 = vector.load %arg3[%c400, %c0_35] : memref<408x128xf32, #tpu.memory_space<vmem>>, vector<1x128xf32>
    %cst_36 = arith.constant dense<0.000000e+00> : vector<64x128xf32>
    %170 = tpu.matmul %163, %164, %cst_36 {dimension_numbers = #tpu.dot_dimension_numbers<[1], [0], [0], [1], [0, 0, 1, 1], [], []>} : vector<64x128xf32>, vector<128x128xf32>, vector<64x128xf32> -> vector<64x128xf32>
    %171 = vector.broadcast %165 : vector<1x128xf32> to vector<64x128xf32>
    %172 = arith.addf %170, %171 : vector<64x128xf32>
    %cst_37 = arith.constant 0.000000e+00 : f32
    %173 = vector.broadcast %cst_37 : f32 to vector<64x128xf32>
    %174 = arith.maximumf %172, %173 : vector<64x128xf32>
    %cst_38 = arith.constant dense<0.000000e+00> : vector<64x128xf32>
    %175 = tpu.matmul %174, %166, %cst_38 {dimension_numbers = #tpu.dot_dimension_numbers<[1], [0], [0], [1], [0, 0, 1, 1], [], []>} : vector<64x128xf32>, vector<128x128xf32>, vector<64x128xf32> -> vector<64x128xf32>
    %176 = vector.broadcast %167 : vector<1x128xf32> to vector<64x128xf32>
    %177 = arith.addf %175, %176 : vector<64x128xf32>
    %cst_39 = arith.constant 0.000000e+00 : f32
    %178 = vector.broadcast %cst_39 : f32 to vector<64x128xf32>
    %179 = arith.maximumf %177, %178 : vector<64x128xf32>
    %cst_40 = arith.constant dense<0.000000e+00> : vector<64x128xf32>
    %180 = tpu.matmul %179, %168, %cst_40 {dimension_numbers = #tpu.dot_dimension_numbers<[1], [0], [0], [1], [0, 0, 1, 1], [], []>} : vector<64x128xf32>, vector<128x128xf32>, vector<64x128xf32> -> vector<64x128xf32>
    %181 = vector.broadcast %169 : vector<1x128xf32> to vector<64x128xf32>
    %182 = arith.addf %180, %181 : vector<64x128xf32>
    %c0_41 = arith.constant 0 : index
    %c0_42 = arith.constant 0 : index
    %183 = vector.load %arg6[%c0_41, %c0_42] : memref<64x128xf32, #tpu.memory_space<vmem>>, vector<64x128xf32>
    tpu.vector_store %arg6[%c0_41, %c0_42], %182 {strides = array<i32>} : memref<64x128xf32, #tpu.memory_space<vmem>>, vector<64x128xf32>,
    return
  }
  func.func @transform_0(%arg0: i32) -> (i32, i32) {
    %c0_i32 = arith.constant 0 : i32
    %c0_i32_0 = arith.constant 0 : i32
    %c0_i32_1 = arith.constant 0 : i32
    return %c0_i32, %c0_i32_0 : i32, i32
  }
  func.func @transform_1(%arg0: i32) -> (i32, i32) {
    %c0_i32 = arith.constant 0 : i32
    %c0_i32_0 = arith.constant 0 : i32
    %c0_i32_1 = arith.constant 0 : i32
    return %c0_i32, %c0_i32_0 : i32, i32
  }
  func.func @transform_2(%arg0: i32) -> (i32, i32) {
    %c0_i32 = arith.constant 0 : i32
    %c0_i32_0 = arith.constant 0 : i32
    %c0_i32_1 = arith.constant 0 : i32
    return %c0_i32, %c0_i32_0 : i32, i32
  }
  func.func @transform_3(%arg0: i32) -> (i32, i32) {
    %c0_i32 = arith.constant 0 : i32
    %c0_i32_0 = arith.constant 0 : i32
    %c0_i32_1 = arith.constant 0 : i32
    return %c0_i32, %c0_i32_0 : i32, i32
  }
  func.func @transform_4(%arg0: i32) -> (i32, i32) {
    %c0_i32 = arith.constant 0 : i32
    %c0_i32_0 = arith.constant 0 : i32
    %c0_i32_1 = arith.constant 0 : i32
    return %c0_i32, %c0_i32_0 : i32, i32
  }
  func.func @transform_5(%arg0: i32) -> (i32, i32) {
    %c0_i32 = arith.constant 0 : i32
    %c0_i32_0 = arith.constant 0 : i32
    %c0_i32_1 = arith.constant 0 : i32
    return %c0_i32, %c0_i32_0 : i32, i32
  }
  func.func @transform_6(%arg0: i32) -> (i32, i32) {
    %c0_i32 = arith.constant 0 : i32
    %c0_i32_0 = arith.constant 0 : i32
    %c0_i32_1 = arith.constant 0 : i32
    return %c0_i32, %c0_i32_0 : i32, i32
  }
  func.func @transform_7(%arg0: i32) -> (i32, i32) {
    %c0_i32 = arith.constant 0 : i32
    %c0_i32_0 = arith.constant 0 : i32
    %c0_i32_1 = arith.constant 0 : i32
    return %c0_i32, %c0_i32_0 : i32, i32
  }
}

</mosaic_0001>

<bundles_post_ra>
// kernel: nograd_rnn_forward.1
= control target key start
LH: loop header
LB: loop body
LE: loop exit
PB: predicated region body
PF: predicated region fallthrough
CT: control target
= control target key end

     0   :  { %v4373_v3 = vmov 0.0   ;;  %vm126_vm0 = vcmask 130048   ;;  %s4365_s1 = inlined_call_operand.vmem [shape: f32[152,512], index: 1, kind: input, shape index: {}]   ;;  %s4366_s0 = inlined_call_operand.vmem [shape: f32[64,16], index: 0, kind: input, shape index: {}]   ;;  %s4367_s3 = inlined_call_operand.vmem [shape: f32[8,128], index: 3, kind: input, shape index: {}]   ;;  %s4368_s4 = inlined_call_operand.vmem [shape: f32[8,128], index: 4, kind: input, shape index: {}]   ;;  %s4369_s2 = inlined_call_operand.vmem [shape: f32[408,128], index: 2, kind: input, shape index: {}]   ;;  %s4370_s7 = inlined_call_operand.vmem [shape: f32[8,128], index: 7, kind: output, shape index: {2}]   ;;  %s4371_s6 = inlined_call_operand.vmem [shape: f32[8,128], index: 6, kind: output, shape index: {1}]   ;;  %s4372_s5 = inlined_call_operand.vmem [shape: f32[64,128], index: 5, kind: output, shape index: {0}]  }
   0x1   :  { %v28_v0 = vld [vmem:[%s4365_s1 + $0x28] sm:$0xff]  ;;  %v30_v1 = vld [vmem:[%s4365_s1 + $0x38] sm:$0xff]  ;;  %v27_v2 = vld [vmem:[%s4365_s1 + $0x20] sm:$0xff]  ;;  %215 = vmatprep.mubr.f32.mxu0 %v4373_v3  ;;  %328 = vmatprep.mubr.f32.mxu1 %v4373_v3 }
   0x2   :  { %179 = vmatprep.subr.mxu0 %v28_v0  ;;  %292 = vmatprep.subr.mxu1 %v30_v1  ;;  %v29_v4 = vld [vmem:[%s4365_s1 + $0x30] sm:$0xff]  ;;  %v24_v5 = vld [vmem:[%s4365_s1 + $0x8] sm:$0xff]  ;;  %v26_v6 = vld [vmem:[%s4365_s1 + $0x18] sm:$0xff] }
   0x3   :  { %180 = vmatpush1.msra.mxu0 %v27_v2  ;;  %293 = vmatpush1.msra.mxu1 %v29_v4  ;;  %v23_v7 = vld [vmem:[%s4365_s1] sm:$0xff]  ;;  %v25_v8 = vld [vmem:[%s4365_s1 + $0x10] sm:$0xff]  ;;  %v2701_v10 = vld [vmem:[%s4365_s1 + $0x228] sm:$0xff] }
   0x4   :  { %v97_v9 = vld [vmem:[%s4366_s0] sm:$0xff]  ;;  %181 = vmatprep.subr.mxu0 %v24_v5  ;;  %294 = vmatprep.subr.mxu1 %v26_v6  ;;  %4466 = vst [vmem:[#allocation2_spill] sm:$0xff] %v2701_v10  ;;  %v2706_v11 = vld [vmem:[%s4365_s1 + $0x238] sm:$0xff]  ;;  %v2716_v13 = vld [vmem:[%s4365_s1 + $0x230] sm:$0xff] }
   0x5   :  { %4467 = vst [vmem:[#allocation3_spill] sm:$0xff] %v2706_v11  ;;  %182 = vmatpush1.msra.mxu0 %v23_v7  ;;  %295 = vmatpush1.msra.mxu1 %v25_v8  ;;  %v2711_v12 = vld [vmem:[%s4365_s1 + $0x220] sm:$0xff]  ;;  %v2723_v14 = vld [vmem:[%s4365_s1 + $0x208] sm:$0xff]  ;;  %v2728_v15 = vld [vmem:[%s4365_s1 + $0x218] sm:$0xff] }
   0x6   :  { %2156 = vmatmul.mubr.msk.f32.vlgmr.msra.gmra.mxu0 %vm126_vm0, %v97_v9  ;;  %2164 = vmatmul.mubr.msk.f32.vlgmr.msra.gmra.mxu1 %vm126_vm0, %v97_v9  ;;  %v2737_v16 = vld [vmem:[%s4365_s1 + $0x200] sm:$0xff]  ;;  %v2742_v17 = vld [vmem:[%s4365_s1 + $0x210] sm:$0xff]  ;;  %v98_v18 = vld [vmem:[%s4366_s0 + $0x8] sm:$0xff] }
   0x7   :  { %379 = vmatprep.subr.mxu0 %v2701_v10  ;;  %450 = vmatprep.subr.mxu1 %v2706_v11  ;;  %v2754_v19 = vld [vmem:[%s4365_s1 + $0x1e8] sm:$0xff]  ;;  %v2759_v20 = vld [vmem:[%s4365_s1 + $0x1f8] sm:$0xff]  ;;  %v2766_v21 = vld [vmem:[%s4365_s1 + $0x1e0] sm:$0xff] }
   0x8   :  { %380 = vmatpush1.msra.mxu0 %v2711_v12  ;;  %451 = vmatpush1.msra.mxu1 %v2716_v13  ;;  %v2771_v22 = vld [vmem:[%s4365_s1 + $0x1f0] sm:$0xff]  ;;  %v2778_v23 = vld [vmem:[%s4365_s1 + $0x1c8] sm:$0xff]  ;;  %v2783_v24 = vld [vmem:[%s4365_s1 + $0x1d8] sm:$0xff] }
   0x9   :  { %381 = vmatprep.subr.mxu0 %v2723_v14  ;;  %452 = vmatprep.subr.mxu1 %v2728_v15  ;;  %v2792_v25 = vld [vmem:[%s4365_s1 + $0x1c0] sm:$0xff]  ;;  %v2797_v26 = vld [vmem:[%s4365_s1 + $0x1d0] sm:$0xff]  ;;  %v2809_v28 = vld [vmem:[%s4365_s1 + $0x1a8] sm:$0xff] }
   0xa   :  { %221 = vmatprep.mubr.f32.mxu0 %v4373_v3  ;;  %334 = vmatprep.mubr.f32.mxu1 %v4373_v3  ;;  %v99_v27 = vld [vmem:[%s4366_s0 + $0x10] sm:$0xff]  ;;  %v2814_v29 = vld [vmem:[%s4365_s1 + $0x1b8] sm:$0xff]  ;;  %v2821_v30 = vld [vmem:[%s4365_s1 + $0x1a0] sm:$0xff] }
   0xb   :  { %382 = vmatpush1.msra.mxu0 %v2737_v16  ;;  %453 = vmatpush1.msra.mxu1 %v2742_v17  ;;  %v2826_v31 = vld [vmem:[%s4365_s1 + $0x1b0] sm:$0xff]  ;;  %v2833_v32 = vld [vmem:[%s4365_s1 + $0x188] sm:$0xff]  ;;  %v2838_v33 = vld [vmem:[%s4365_s1 + $0x198] sm:$0xff] }
   0xc   :  { %2157 = vmatmul.mubr.msk.f32.gmra.mxu0 %vm126_vm0, %v98_v18  ;;  %2165 = vmatmul.mubr.msk.f32.gmra.mxu1 %vm126_vm0, %v98_v18  ;;  %v2847_v34 = vld [vmem:[%s4365_s1 + $0x180] sm:$0xff]  ;;  %v2852_v35 = vld [vmem:[%s4365_s1 + $0x190] sm:$0xff]  ;;  %v100_v36 = vld [vmem:[%s4366_s0 + $0x18] sm:$0xff] }
   0xd   :  { %383 = vmatprep.subr.mxu0 %v2754_v19  ;;  %454 = vmatprep.subr.mxu1 %v2759_v20  ;;  %v2864_v37 = vld [vmem:[%s4365_s1 + $0x168] sm:$0xff]  ;;  %v2869_v38 = vld [vmem:[%s4365_s1 + $0x178] sm:$0xff]  ;;  %v2876_v39 = vld [vmem:[%s4365_s1 + $0x160] sm:$0xff] }
   0xe   :  { %384 = vmatpush1.msra.mxu0 %v2766_v21  ;;  %455 = vmatpush1.msra.mxu1 %v2771_v22  ;;  %v2881_v40 = vld [vmem:[%s4365_s1 + $0x170] sm:$0xff]  ;;  %v2888_v41 = vld [vmem:[%s4365_s1 + $0x148] sm:$0xff]  ;;  %v2893_v42 = vld [vmem:[%s4365_s1 + $0x158] sm:$0xff] }
   0xf   :  { %385 = vmatprep.subr.mxu0 %v2778_v23  ;;  %456 = vmatprep.subr.mxu1 %v2783_v24  ;;  %v2902_v43 = vld [vmem:[%s4365_s1 + $0x140] sm:$0xff]  ;;  %v2907_v44 = vld [vmem:[%s4365_s1 + $0x150] sm:$0xff]  ;;  %v2919_v46 = vld [vmem:[%s4365_s1 + $0x128] sm:$0xff] }
  0x10   :  { %227 = vmatprep.mubr.f32.mxu0 %v4373_v3  ;;  %340 = vmatprep.mubr.f32.mxu1 %v4373_v3  ;;  %v101_v45 = vld [vmem:[%s4366_s0 + $0x20] sm:$0xff]  ;;  %v2924_v47 = vld [vmem:[%s4365_s1 + $0x138] sm:$0xff]  ;;  %v2936_v49 = vld [vmem:[%s4365_s1 + $0x130] sm:$0xff] }
  0x11   :  { %386 = vmatpush1.msra.mxu0 %v2792_v25  ;;  %457 = vmatpush1.msra.mxu1 %v2797_v26  ;;  %v2931_v48 = vld [vmem:[%s4365_s1 + $0x120] sm:$0xff]  ;;  %v2943_v50 = vld [vmem:[%s4365_s1 + $0x108] sm:$0xff]  ;;  %v2948_v51 = vld [vmem:[%s4365_s1 + $0x118] sm:$0xff] }
  0x12   :  { %2158 = vmatmul.mubr.msk.f32.gmra.mxu0 %vm126_vm0, %v99_v27  ;;  %2166 = vmatmul.mubr.msk.f32.gmra.mxu1 %vm126_vm0, %v99_v27  ;;  %v2957_v52 = vld [vmem:[%s4365_s1 + $0x100] sm:$0xff]  ;;  %v2962_v53 = vld [vmem:[%s4365_s1 + $0x110] sm:$0xff]  ;;  %v102_v54 = vld [vmem:[%s4366_s0 + $0x28] sm:$0xff] }
  0x13   :  { %387 = vmatprep.subr.mxu0 %v2809_v28  ;;  %458 = vmatprep.subr.mxu1 %v2814_v29  ;;  %v2974_v55 = vld [vmem:[%s4365_s1 + $0xe8] sm:$0xff]  ;;  %v2979_v56 = vld [vmem:[%s4365_s1 + $0xf8] sm:$0xff]  ;;  %v2986_v57 = vld [vmem:[%s4365_s1 + $0xe0] sm:$0xff] }
  0x14   :  { %388 = vmatpush1.msra.mxu0 %v2821_v30  ;;  %459 = vmatpush1.msra.mxu1 %v2826_v31  ;;  %v2991_v58 = vld [vmem:[%s4365_s1 + $0xf0] sm:$0xff]  ;;  %v2998_v59 = vld [vmem:[%s4365_s1 + $0xc8] sm:$0xff]  ;;  %v3003_v60 = vld [vmem:[%s4365_s1 + $0xd8] sm:$0xff] }
  0x15   :  { %389 = vmatprep.subr.mxu0 %v2833_v32  ;;  %460 = vmatprep.subr.mxu1 %v2838_v33  ;;  %4468 = vst [vmem:[#allocation4_spill] sm:$0xff] %v2998_v59  ;;  %4469 = vst [vmem:[#allocation5_spill] sm:$0xff] %v3003_v60  ;;  %v3012_v61 = vld [vmem:[%s4365_s1 + $0xc0] sm:$0xff]  ;;  %v3017_v62 = vld [vmem:[%s4365_s1 + $0xd0] sm:$0xff] }
  0x16   :  { %233 = vmatprep.mubr.f32.mxu0 %v4373_v3  ;;  %346 = vmatprep.mubr.f32.mxu1 %v4373_v3  ;;  %4470 = vst [vmem:[#allocation6_spill] sm:$0xff] %v3012_v61  ;;  %4471 = vst [vmem:[#allocation7_spill] sm:$0xff] %v3017_v62  ;;  %v103_v63 = vld [vmem:[%s4366_s0 + $0x30] sm:$0xff]  ;;  %v3029_v0 = vld [vmem:[%s4365_s1 + $0xa8] sm:$0xff] }
  0x17   :  { %390 = vmatpush1.msra.mxu0 %v2847_v34  ;;  %461 = vmatpush1.msra.mxu1 %v2852_v35  ;;  %4472 = vst [vmem:[#allocation8_spill] sm:$0xff] %v3029_v0  ;;  %v3034_v1 = vld [vmem:[%s4365_s1 + $0xb8] sm:$0xff]  ;;  %v3041_v2 = vld [vmem:[%s4365_s1 + $0xa0] sm:$0xff]  ;;  %v3046_v4 = vld [vmem:[%s4365_s1 + $0xb0] sm:$0xff] }
  0x18   :  { %2159 = vmatmul.mubr.msk.f32.gmra.mxu0 %vm126_vm0, %v100_v36  ;;  %2167 = vmatmul.mubr.msk.f32.gmra.mxu1 %vm126_vm0, %v100_v36  ;;  %4473 = vst [vmem:[#allocation9_spill] sm:$0xff] %v3034_v1  ;;  %4474 = vst [vmem:[#allocation10_spill] sm:$0xff] %v3041_v2  ;;  %v3053_v5 = vld [vmem:[%s4365_s1 + $0x88] sm:$0xff]  ;;  %v3058_v6 = vld [vmem:[%s4365_s1 + $0x98] sm:$0xff] }
  0x19   :  { %391 = vmatprep.subr.mxu0 %v2864_v37  ;;  %462 = vmatprep.subr.mxu1 %v2869_v38  ;;  %4475 = vst [vmem:[#allocation11_spill] sm:$0xff] %v3046_v4  ;;  %4476 = vst [vmem:[#allocation12_spill] sm:$0xff] %v3053_v5  ;;  %v3067_v7 = vld [vmem:[%s4365_s1 + $0x80] sm:$0xff]  ;;  %v3072_v8 = vld [vmem:[%s4365_s1 + $0x90] sm:$0xff] }
  0x1a   :  { %392 = vmatpush1.msra.mxu0 %v2876_v39  ;;  %463 = vmatpush1.msra.mxu1 %v2881_v40  ;;  %4477 = vst [vmem:[#allocation13_spill] sm:$0xff] %v3058_v6  ;;  %4478 = vst [vmem:[#allocation14_spill] sm:$0xff] %v3067_v7  ;;  %v104_v9 = vld [vmem:[%s4366_s0 + $0x38] sm:$0xff]  ;;  %v3084_v18 = vld [vmem:[%s4365_s1 + $0x68] sm:$0xff] }
  0x1b   :  { %393 = vmatprep.subr.mxu0 %v2888_v41  ;;  %464 = vmatprep.subr.mxu1 %v2893_v42  ;;  %4479 = vst [vmem:[#allocation15_spill] sm:$0xff] %v3072_v8  ;;  %4480 = vst [vmem:[#allocation16_spill] sm:$0xff] %v3084_v18  ;;  %v3089_v27 = vld [vmem:[%s4365_s1 + $0x78] sm:$0xff]  ;;  %v3096_v36 = vld [vmem:[%s4365_s1 + $0x60] sm:$0xff] }
  0x1c   :  { %239 = vmatprep.mubr.f32.mxu0 %v4373_v3  ;;  %352 = vmatprep.mubr.f32.mxu1 %v4373_v3  ;;  %4481 = vst [vmem:[#allocation17_spill] sm:$0xff] %v3089_v27  ;;  %4482 = vst [vmem:[#allocation18_spill] sm:$0xff] %v3096_v36 }
  0x1d   :  { %394 = vmatpush1.msra.mxu0 %v2902_v43  ;;  %465 = vmatpush1.msra.mxu1 %v2907_v44 }
  0x1e   :  { %2160 = vmatmul.mubr.msk.f32.gmra.mxu0 %vm126_vm0, %v101_v45  ;;  %2168 = vmatmul.mubr.msk.f32.gmra.mxu1 %vm126_vm0, %v101_v45  ;;  %v3101_v45 = vld [vmem:[%s4365_s1 + $0x70] sm:$0xff] }
  0x1f   :  { %395 = vmatprep.subr.mxu0 %v2919_v46  ;;  %466 = vmatprep.subr.mxu1 %v2924_v47  ;;  %4483 = vst [vmem:[#allocation19_spill] sm:$0xff] %v3101_v45 }
  0x20   :  { %396 = vmatpush1.msra.mxu0 %v2931_v48  ;;  %467 = vmatpush1.msra.mxu1 %v2936_v49 }
  0x21   :  { %397 = vmatprep.subr.mxu0 %v2943_v50  ;;  %468 = vmatprep.subr.mxu1 %v2948_v51 }
  0x22   :  { %245 = vmatprep.mubr.f32.mxu0 %v4373_v3  ;;  %358 = vmatprep.mubr.f32.mxu1 %v4373_v3 }
  0x23   :  { %398 = vmatpush1.msra.mxu0 %v2957_v52  ;;  %469 = vmatpush1.msra.mxu1 %v2962_v53 }
  0x24   :  { %2161 = vmatmul.mubr.msk.f32.gmra.mxu0 %vm126_vm0, %v102_v54  ;;  %2169 = vmatmul.mubr.msk.f32.gmra.mxu1 %vm126_vm0, %v102_v54  ;;  %v3108_v54 = vld [vmem:[%s4365_s1 + $0x48] sm:$0xff] }
  0x25   :  { %399 = vmatprep.subr.mxu0 %v2974_v55  ;;  %470 = vmatprep.subr.mxu1 %v2979_v56  ;;  %4484 = vst [vmem:[#allocation20_spill] sm:$0xff] %v3108_v54 }
  0x26   :  { %400 = vmatpush1.msra.mxu0 %v2986_v57  ;;  %471 = vmatpush1.msra.mxu1 %v2991_v58 }
  0x27   :  { %401 = vmatprep.subr.mxu0 %v2998_v59  ;;  %472 = vmatprep.subr.mxu1 %v3003_v60 }
  0x28   :  { %251 = vmatprep.mubr.f32.mxu0 %v4373_v3  ;;  %364 = vmatprep.mubr.f32.mxu1 %v4373_v3 }
  0x29   :  { %402 = vmatpush1.msra.mxu0 %v3012_v61  ;;  %473 = vmatpush1.msra.mxu1 %v3017_v62 }
  0x2a   :  { %2162 = vmatmul.mubr.msk.f32.gmra.mxu0 %vm126_vm0, %v103_v63  ;;  %2170 = vmatmul.mubr.msk.f32.gmra.mxu1 %vm126_vm0, %v103_v63  ;;  %v3113_v63 = vld [vmem:[%s4365_s1 + $0x58] sm:$0xff] }
  0x2b   :  { %403 = vmatprep.subr.mxu0 %v3029_v0  ;;  %474 = vmatprep.subr.mxu1 %v3034_v1  ;;  %4485 = vst [vmem:[#allocation21_spill] sm:$0xff] %v3113_v63 }
  0x2c   :  { %404 = vmatpush1.msra.mxu0 %v3041_v2  ;;  %475 = vmatpush1.msra.mxu1 %v3046_v4 }
  0x2d   :  { %405 = vmatprep.subr.mxu0 %v3053_v5  ;;  %476 = vmatprep.subr.mxu1 %v3058_v6 }
  0x2e   :  { %257 = vmatprep.mubr.f32.mxu0 %v4373_v3  ;;  %370 = vmatprep.mubr.f32.mxu1 %v4373_v3  ;;  %v3120_v3 = vld [vmem:[%s4365_s1 + $0x40] sm:$0xff] }
  0x2f   :  { %406 = vmatpush1.msra.mxu0 %v3067_v7  ;;  %477 = vmatpush1.msra.mxu1 %v3072_v8  ;;  %4486 = vst [vmem:[#allocation22_spill] sm:$0xff] %v3120_v3 }
  0x30   :  { %2163 = vmatmul.mubr.msk.f32.gmra.mxu0 %vm126_vm0, %v104_v9  ;;  %2171 = vmatmul.mubr.msk.f32.gmra.mxu1 %vm126_vm0, %v104_v9  ;;  %v3127_v9 = vld [vmem:[%s4365_s1 + $0x50] sm:$0xff] }
  0x31   :  { %407 = vmatprep.subr.mxu0 %v3084_v18  ;;  %478 = vmatprep.subr.mxu1 %v3089_v27  ;;  %4487 = vst [vmem:[#allocation23_spill] sm:$0xff] %v3127_v9  ;;  %v377_v27 = vld [vmem:[%s4367_s3] sm:$0xff]  ;;  %v4488_v18 = vmov 0.0  }
  0x32   :  { %408 = vmatpush1.msra.mxu0 %v3096_v36  ;;  %479 = vmatpush1.msra.mxu1 %v3101_v45 }
  0x33   :  { %409 = vmatprep.subr.mxu0 %v3108_v54  ;;  %480 = vmatprep.subr.mxu1 %v3113_v63 }
  0x34   :  { %410 = vmatpush1.msra.mxu0 %v3120_v3  ;;  %443 = vmatprep.mubr.f32.mxu0 %v4488_v18 }
  0x35   :  { %481 = vmatpush1.msra.mxu1 %v3127_v9  ;;  %514 = vmatprep.mubr.f32.mxu1 %v4488_v18 }
  0x36   :  { %444 = vmatmul.mubr.f32.vlgmr.msra.gmra.mxu0 %v377_v27  ;;  %515 = vmatmul.mubr.f32.vlgmr.msra.gmra.mxu1 %v377_v27  ;;  %v4489_v27 = vld [vmem:[#allocation16_spill] sm:$0xff] }
  0x37   :  { %549 = vmatprep.subr.mxu0 %v2701_v10  ;;  %620 = vmatprep.subr.mxu1 %v2706_v11 }
  0x38   :  { %550 = vmatpush1.msra.mxu0 %v2711_v12  ;;  %621 = vmatpush1.msra.mxu1 %v2716_v13 }
  0x39   :  { %551 = vmatprep.subr.mxu0 %v2723_v14  ;;  %622 = vmatprep.subr.mxu1 %v2728_v15 }
  0x3a   :  { %552 = vmatpush1.msra.mxu0 %v2737_v16  ;;  %623 = vmatpush1.msra.mxu1 %v2742_v17 }
  0x3b   :  { %553 = vmatprep.subr.mxu0 %v2754_v19  ;;  %624 = vmatprep.subr.mxu1 %v2759_v20 }
  0x3c   :  { %554 = vmatpush1.msra.mxu0 %v2766_v21  ;;  %625 = vmatpush1.msra.mxu1 %v2771_v22 }
  0x3d   :  { %555 = vmatprep.subr.mxu0 %v2778_v23  ;;  %626 = vmatprep.subr.mxu1 %v2783_v24 }
  0x3e   :  { %556 = vmatpush1.msra.mxu0 %v2792_v25  ;;  %627 = vmatpush1.msra.mxu1 %v2797_v26 }
  0x3f   :  { %557 = vmatprep.subr.mxu0 %v2809_v28  ;;  %628 = vmatprep.subr.mxu1 %v2814_v29 }
  0x40   :  { %558 = vmatpush1.msra.mxu0 %v2821_v30  ;;  %629 = vmatpush1.msra.mxu1 %v2826_v31 }
  0x41   :  { %559 = vmatprep.subr.mxu0 %v2833_v32  ;;  %630 = vmatprep.subr.mxu1 %v2838_v33 }
  0x42   :  { %560 = vmatpush1.msra.mxu0 %v2847_v34  ;;  %631 = vmatpush1.msra.mxu1 %v2852_v35 }
  0x43   :  { %561 = vmatprep.subr.mxu0 %v2864_v37  ;;  %632 = vmatprep.subr.mxu1 %v2869_v38 }
  0x44   :  { %562 = vmatpush1.msra.mxu0 %v2876_v39  ;;  %633 = vmatpush1.msra.mxu1 %v2881_v40 }
  0x45   :  { %563 = vmatprep.subr.mxu0 %v2888_v41  ;;  %634 = vmatprep.subr.mxu1 %v2893_v42 }
  0x46   :  { %564 = vmatpush1.msra.mxu0 %v2902_v43  ;;  %635 = vmatpush1.msra.mxu1 %v2907_v44 }
  0x47   :  { %565 = vmatprep.subr.mxu0 %v2919_v46  ;;  %636 = vmatprep.subr.mxu1 %v2924_v47 }
  0x48   :  { %566 = vmatpush1.msra.mxu0 %v2931_v48  ;;  %637 = vmatpush1.msra.mxu1 %v2936_v49 }
  0x49   :  { %567 = vmatprep.subr.mxu0 %v2943_v50  ;;  %638 = vmatprep.subr.mxu1 %v2948_v51 }
  0x4a   :  { %568 = vmatpush1.msra.mxu0 %v2957_v52  ;;  %639 = vmatpush1.msra.mxu1 %v2962_v53 }
  0x4b   :  { %569 = vmatprep.subr.mxu0 %v2974_v55  ;;  %640 = vmatprep.subr.mxu1 %v2979_v56 }
  0x4c   :  { %570 = vmatpush1.msra.mxu0 %v2986_v57  ;;  %641 = vmatpush1.msra.mxu1 %v2991_v58 }
  0x4d   :  { %571 = vmatprep.subr.mxu0 %v2998_v59  ;;  %642 = vmatprep.subr.mxu1 %v3003_v60 }
  0x4e   :  { %572 = vmatpush1.msra.mxu0 %v3012_v61  ;;  %643 = vmatpush1.msra.mxu1 %v3017_v62  ;;  %v4490_v61 = vld [vmem:[#allocation17_spill] sm:$0xff] }
  0x4f   :  { %573 = vmatprep.subr.mxu0 %v3029_v0  ;;  %644 = vmatprep.subr.mxu1 %v3034_v1 }
  0x50   :  { %574 = vmatpush1.msra.mxu0 %v3041_v2  ;;  %645 = vmatpush1.msra.mxu1 %v3046_v4 }
  0x51   :  { %575 = vmatprep.subr.mxu0 %v3053_v5  ;;  %646 = vmatprep.subr.mxu1 %v3058_v6 }
  0x52   :  { %576 = vmatpush1.msra.mxu0 %v3067_v7  ;;  %647 = vmatpush1.msra.mxu1 %v3072_v8 }
  0x53   :  { %577 = vmatprep.subr.mxu0 %v4489_v27  ;;  %648 = vmatprep.subr.mxu1 %v4490_v61  ;;  %v106_v61 = vlaneseq }
  0x54   :  { %578 = vmatpush1.msra.mxu0 %v3096_v36  ;;  %649 = vmatpush1.msra.mxu1 %v3101_v45 }
  0x55   :  { %579 = vmatprep.subr.mxu0 %v3108_v54  ;;  %650 = vmatprep.subr.mxu1 %v3113_v63  ;;  %v107_v36 = vshrl.u32 %v106_v61, 7 }
  0x56   :  { %580 = vmatpush1.msra.mxu0 %v3120_v3  ;;  %613 = vmatprep.mubr.f32.mxu0 %v4488_v18  ;;  %v2155_v3 = vld [vmem:[%s4365_s1 + $0x240] ss:$8 sm:$0xf] }
  0x57   :  { %651 = vmatpush1.msra.mxu1 %v3127_v9  ;;  %684 = vmatprep.mubr.f32.mxu1 %v4488_v18  ;;  %v108_v54 = vsub.s32 0, %v107_v36  ;;  %v116_v63 = vsub.s32 2, %v107_v36  ;;  %v112_v18 = vsub.s32 1, %v107_v36 }
  0x58   :  { %719 = vmatprep.subr.mxu0 %v2701_v10  ;;  %790 = vmatprep.subr.mxu1 %v2706_v11  ;;  %v120_v10 = vsub.s32 3, %v107_v36 }
  0x59   :  { %v109_v7 = vrot.slane %v2155_v3, %v108_v54  ;;  %v3217_v11 = vrot.slane %v2155_v3, %v116_v63  ;;  %v113_v5 = vrot.slane %v2155_v3, %v112_v18 }
  0x5a   :  { %v3219_v4 = vrot.slane %v2155_v3, %v120_v10 }
  0xc6   :  { %v3206_v27 = vpop.f32.mrf.mxu0  ;;  %v3208_v45 = vpop.f32.mrf.mxu1 }
  0xc8   :  { %v3213_v8 = vpop.f32.mrf.mxu0  ;;  %v3215_v9 = vpop.f32.mrf.mxu1 }
  0xcc   :  { %v223_v61 = vpop.f32.mrf.mxu0  ;;  %v336_v6 = vpop.f32.mrf.mxu1 }
  0xcd   :  { %v3221_v2 = vadd.f32 %v223_v61, %v109_v7  ;;  %v3224_v1 = vadd.f32 %v336_v6, %v3217_v11 }
  0xce   :  { %v225_v0 = vpop.f32.mrf.mxu0  ;;  %v338_v62 = vpop.f32.mrf.mxu1 }
  0xcf   :  { %4491 = vst [vmem:[#allocation24_spill] sm:$0xff] %v3221_v2  ;;  %4492 = vst [vmem:[#allocation25_spill] sm:$0xff] %v3224_v1  ;;  %v3226_v60 = vadd.f32 %v225_v0, %v113_v5  ;;  %v3229_v59 = vadd.f32 %v338_v62, %v3219_v4 }
  0xd1   :  { %4493 = vst [vmem:[#allocation26_spill] sm:$0xff] %v3226_v60  ;;  %4494 = vst [vmem:[#allocation27_spill] sm:$0xff] %v3229_v59 }
  0xd2   :  { %v229_v36 = vpop.f32.mrf.mxu0  ;;  %v342_v54 = vpop.f32.mrf.mxu1 }
  0xd3   :  { %v3231_v63 = vadd.f32 %v229_v36, %v109_v7  ;;  %v3234_v18 = vadd.f32 %v342_v54, %v3217_v11 }
  0xd4   :  { %v231_v3 = vpop.f32.mrf.mxu0  ;;  %v344_v10 = vpop.f32.mrf.mxu1 }
  0xd5   :  { %4495 = vst [vmem:[#allocation28_spill] sm:$0xff] %v3231_v63  ;;  %4496 = vst [vmem:[#allocation29_spill] sm:$0xff] %v3234_v18  ;;  %v3236_v61 = vadd.f32 %v231_v3, %v113_v5  ;;  %v3239_v6 = vadd.f32 %v344_v10, %v3219_v4 }
  0xd7   :  { %4497 = vst [vmem:[#allocation30_spill] sm:$0xff] %v3236_v61  ;;  %4498 = vst [vmem:[#allocation31_spill] sm:$0xff] %v3239_v6 }
  0xd8   :  { %v235_v1 = vpop.f32.mrf.mxu0  ;;  %v348_v0 = vpop.f32.mrf.mxu1 }
  0xd9   :  { %v3241_v60 = vadd.f32 %v235_v1, %v109_v7  ;;  %v3244_v62 = vadd.f32 %v348_v0, %v3217_v11 }
  0xda   :  { %v237_v59 = vpop.f32.mrf.mxu0  ;;  %v350_v36 = vpop.f32.mrf.mxu1 }
  0xdb   :  { %4499 = vst [vmem:[#allocation32_spill] sm:$0xff] %v3241_v60  ;;  %4500 = vst [vmem:[#allocation33_spill] sm:$0xff] %v3244_v62  ;;  %v3246_v63 = vadd.f32 %v237_v59, %v113_v5  ;;  %v3249_v54 = vadd.f32 %v350_v36, %v3219_v4 }
  0xdd   :  { %4501 = vst [vmem:[#allocation34_spill] sm:$0xff] %v3246_v63  ;;  %4502 = vst [vmem:[#allocation35_spill] sm:$0xff] %v3249_v54 }
  0xde   :  { %v241_v18 = vpop.f32.mrf.mxu0  ;;  %v354_v3 = vpop.f32.mrf.mxu1 }
  0xdf   :  { %v3251_v61 = vadd.f32 %v241_v18, %v109_v7  ;;  %v3254_v10 = vadd.f32 %v354_v3, %v3217_v11 }
  0xe0   :  { %v243_v6 = vpop.f32.mrf.mxu0  ;;  %v356_v1 = vpop.f32.mrf.mxu1 }
  0xe1   :  { %4503 = vst [vmem:[#allocation36_spill] sm:$0xff] %v3251_v61  ;;  %4504 = vst [vmem:[#allocation37_spill] sm:$0xff] %v3254_v10  ;;  %v3256_v60 = vadd.f32 %v243_v6, %v113_v5  ;;  %v3259_v0 = vadd.f32 %v356_v1, %v3219_v4 }
  0xe3   :  { %4505 = vst [vmem:[#allocation38_spill] sm:$0xff] %v3256_v60  ;;  %4506 = vst [vmem:[#allocation39_spill] sm:$0xff] %v3259_v0 }
  0xe4   :  { %v247_v62 = vpop.f32.mrf.mxu0  ;;  %v360_v59 = vpop.f32.mrf.mxu1 }
  0xe5   :  { %v3261_v63 = vadd.f32 %v247_v62, %v109_v7  ;;  %v3264_v36 = vadd.f32 %v360_v59, %v3217_v11 }
  0xe6   :  { %v249_v54 = vpop.f32.mrf.mxu0  ;;  %v362_v18 = vpop.f32.mrf.mxu1 }
  0xe7   :  { %4507 = vst [vmem:[#allocation40_spill] sm:$0xff] %v3261_v63  ;;  %4508 = vst [vmem:[#allocation41_spill] sm:$0xff] %v3264_v36  ;;  %v3266_v61 = vadd.f32 %v249_v54, %v113_v5  ;;  %v3269_v3 = vadd.f32 %v362_v18, %v3219_v4 }
  0xe9   :  { %4509 = vst [vmem:[#allocation42_spill] sm:$0xff] %v3266_v61  ;;  %4510 = vst [vmem:[#allocation43_spill] sm:$0xff] %v3269_v3 }
  0xea   :  { %v253_v10 = vpop.f32.mrf.mxu0  ;;  %v366_v6 = vpop.f32.mrf.mxu1 }
  0xeb   :  { %v3271_v60 = vadd.f32 %v253_v10, %v109_v7  ;;  %v3274_v1 = vadd.f32 %v366_v6, %v3217_v11 }
  0xec   :  { %v255_v0 = vpop.f32.mrf.mxu0  ;;  %v368_v62 = vpop.f32.mrf.mxu1 }
  0xed   :  { %4511 = vst [vmem:[#allocation44_spill] sm:$0xff] %v3271_v60  ;;  %4512 = vst [vmem:[#allocation45_spill] sm:$0xff] %v3274_v1  ;;  %v3276_v63 = vadd.f32 %v255_v0, %v113_v5  ;;  %v3279_v59 = vadd.f32 %v368_v62, %v3219_v4  ;;  %v218_v0 = vadd.f32 %v3206_v27, %v109_v7 }
  0xee   :  { %v220_v62 = vadd.f32 %v3213_v8, %v113_v5 }
  0xef   :  { %4513 = vst [vmem:[#allocation46_spill] sm:$0xff] %v3276_v63  ;;  %4514 = vst [vmem:[#allocation47_spill] sm:$0xff] %v3279_v59 }
  0xf0   :  { %v259_v36 = vpop.f32.mrf.mxu0  ;;  %v372_v54 = vpop.f32.mrf.mxu1 }
  0xf1   :  { %v3281_v61 = vadd.f32 %v259_v36, %v109_v7  ;;  %v3284_v18 = vadd.f32 %v372_v54, %v3217_v11 }
  0xf2   :  { %v261_v3 = vpop.f32.mrf.mxu0  ;;  %v374_v10 = vpop.f32.mrf.mxu1 }
  0xf3   :  { %4515 = vst [vmem:[#allocation48_spill] sm:$0xff] %v3281_v61  ;;  %4516 = vst [vmem:[#allocation49_spill] sm:$0xff] %v3284_v18  ;;  %v3286_v60 = vadd.f32 %v261_v3, %v113_v5  ;;  %v3289_v6 = vadd.f32 %v374_v10, %v3219_v4  ;;  %v331_v3 = vadd.f32 %v3208_v45, %v3217_v11  ;;  %v378_v11 = vld [vmem:[%s4368_s4] sm:$0xff] }
  0xf4   :  { %v333_v10 = vadd.f32 %v3215_v9, %v3219_v4 }
  0xf5   :  { %4517 = vst [vmem:[#allocation50_spill] sm:$0xff] %v3286_v60  ;;  %4518 = vst [vmem:[#allocation51_spill] sm:$0xff] %v3289_v6 }
  0xf6   :  { %v445_v1 = vpop.f32.mrf.mxu0  ;;  %v516_v54 = vpop.f32.mrf.mxu1 }
  0xf7   :  { %v521_v59 = vadd.f32 %v445_v1, %v218_v0  ;;  %v523_v18 = vadd.f32 %v516_v54, %v331_v3  ;;  %v4522_v54 = vld [vmem:[#allocation6_spill] sm:$0xff]  ;;  %v4523_v3 = vld [vmem:[#allocation7_spill] sm:$0xff] }
  0xf8   :  { %v447_v63 = vpop.f32.mrf.mxu0  ;;  %v518_v60 = vpop.f32.mrf.mxu1 }
  0xf9   :  { %v2172_v2 = vmul.f32 -1.442695, %v521_v59  ;;  %v522_v36 = vadd.f32 %v447_v63, %v220_v62  ;;  %v2174_v7 = vmul.f32 -1.442695, %v523_v18  ;;  %v524_v6 = vadd.f32 %v518_v60, %v333_v10  ;;  %v4520_v62 = vld [vmem:[#allocation4_spill] sm:$0xff] }
  0xfa   :  { %v4524_v10 = vld [vmem:[#allocation8_spill] sm:$0xff] }
  0xfb   :  { %2436 = vpow2.f32 %v2172_v2  ;;  %v2173_v61 = vmul.f32 -1.442695, %v522_v36  ;;  %v4521_v36 = vld [vmem:[#allocation5_spill] sm:$0xff] }
  0xfd   :  { %2438 = vpow2.f32 %v2173_v61 }
  0xfe   :  { %2440 = vpow2.f32 %v2174_v7  ;;  %v4525_v7 = vld [vmem:[#allocation9_spill] sm:$0xff] }
 0x108   :  { %v2437_v27 = vpop.eup %2436 }
 0x109   :  { %v534_v5 = vadd.f32 1.0, %v2437_v27  ;;  %v4526_v27 = vld [vmem:[#allocation10_spill] sm:$0xff] }
 0x10a   :  { %v2439_v8 = vpop.eup %2438 }
 0x10b   :  { %2442 = vrcp.f32 %v534_v5  ;;  %v535_v63 = vadd.f32 1.0, %v2439_v8  ;;  %v2441_v2 = vpop.eup %2440  ;;  %v4527_v5 = vld [vmem:[#allocation11_spill] sm:$0xff]  ;;  %v4528_v8 = vld [vmem:[#allocation12_spill] sm:$0xff] }
 0x10c   :  { %2444 = vtanh.f32 %v524_v6  ;;  %v536_v59 = vadd.f32 1.0, %v2441_v2  ;;  %v4530_v2 = vld [vmem:[#allocation14_spill] sm:$0xff] }
 0x10d   :  { %2446 = vrcp.f32 %v535_v63  ;;  %v4529_v63 = vld [vmem:[#allocation13_spill] sm:$0xff] }
 0x10e   :  { %2448 = vrcp.f32 %v536_v59  ;;  %v4535_v59 = vld [vmem:[#allocation19_spill] sm:$0xff] }
 0x118   :  { %v2443_v61 = vpop.eup %2442 }
 0x119   :  { %v2445_v45 = vpop.eup %2444 }
 0x11a   :  { %v2447_v1 = vpop.eup %2446  ;;  %v545_v9 = vmul.f32 %v2445_v45, %v2443_v61  ;;  %v4531_v61 = vld [vmem:[#allocation15_spill] sm:$0xff]  ;;  %v4533_v45 = vld [vmem:[#allocation17_spill] sm:$0xff] }
 0x11b   :  { %v544_v4 = vmul.f32 %v2447_v1, %v378_v11  ;;  %v2449_v60 = vpop.eup %2448  ;;  %v4532_v11 = vld [vmem:[#allocation16_spill] sm:$0xff]  ;;  %v4534_v1 = vld [vmem:[#allocation18_spill] sm:$0xff] }
 0x11d   :  { %v3300_v18 = vadd.f32 %v545_v9, %v544_v4  ;;  %v4536_v4 = vld [vmem:[#allocation20_spill] sm:$0xff]  ;;  %v4537_v9 = vld [vmem:[#allocation21_spill] sm:$0xff] }
 0x11f   :  { %2450 = vtanh.f32 %v3300_v18 }
 0x12c   :  { %v2451_v0 = vpop.eup %2450 }
 0x12d   :  { %v3303_v6 = vmul.f32 %v2451_v0, %v2449_v60  ;;  %v4538_v60 = vld [vmem:[#allocation22_spill] sm:$0xff]  ;;  %v4539_v0 = vmov 0.0  }
 0x12f   :  { %4519 = vst [vmem:[#allocation52_spill] sm:$0xff] %v3303_v6  ;;  %614 = vmatmul.mubr.f32.vlgmr.msra.gmra.mxu0 %v3303_v6  ;;  %685 = vmatmul.mubr.f32.vlgmr.msra.gmra.mxu1 %v3303_v6  ;;  %v4540_v6 = vld [vmem:[#allocation23_spill] sm:$0xff] }
 0x130   :  { %720 = vmatpush1.msra.mxu0 %v2711_v12  ;;  %791 = vmatpush1.msra.mxu1 %v2716_v13 }
 0x131   :  { %721 = vmatprep.subr.mxu0 %v2723_v14  ;;  %792 = vmatprep.subr.mxu1 %v2728_v15 }
 0x132   :  { %722 = vmatpush1.msra.mxu0 %v2737_v16  ;;  %793 = vmatpush1.msra.mxu1 %v2742_v17 }
 0x133   :  { %723 = vmatprep.subr.mxu0 %v2754_v19  ;;  %794 = vmatprep.subr.mxu1 %v2759_v20 }
 0x134   :  { %724 = vmatpush1.msra.mxu0 %v2766_v21  ;;  %795 = vmatpush1.msra.mxu1 %v2771_v22 }
 0x135   :  { %725 = vmatprep.subr.mxu0 %v2778_v23  ;;  %796 = vmatprep.subr.mxu1 %v2783_v24 }
 0x136   :  { %726 = vmatpush1.msra.mxu0 %v2792_v25  ;;  %797 = vmatpush1.msra.mxu1 %v2797_v26 }
 0x137   :  { %727 = vmatprep.subr.mxu0 %v2809_v28  ;;  %798 = vmatprep.subr.mxu1 %v2814_v29 }
 0x138   :  { %728 = vmatpush1.msra.mxu0 %v2821_v30  ;;  %799 = vmatpush1.msra.mxu1 %v2826_v31 }
 0x139   :  { %729 = vmatprep.subr.mxu0 %v2833_v32  ;;  %800 = vmatprep.subr.mxu1 %v2838_v33 }
 0x13a   :  { %730 = vmatpush1.msra.mxu0 %v2847_v34  ;;  %801 = vmatpush1.msra.mxu1 %v2852_v35 }
 0x13b   :  { %731 = vmatprep.subr.mxu0 %v2864_v37  ;;  %802 = vmatprep.subr.mxu1 %v2869_v38 }
 0x13c   :  { %732 = vmatpush1.msra.mxu0 %v2876_v39  ;;  %803 = vmatpush1.msra.mxu1 %v2881_v40 }
 0x13d   :  { %733 = vmatprep.subr.mxu0 %v2888_v41  ;;  %804 = vmatprep.subr.mxu1 %v2893_v42 }
 0x13e   :  { %734 = vmatpush1.msra.mxu0 %v2902_v43  ;;  %805 = vmatpush1.msra.mxu1 %v2907_v44 }
 0x13f   :  { %735 = vmatprep.subr.mxu0 %v2919_v46  ;;  %806 = vmatprep.subr.mxu1 %v2924_v47 }
 0x140   :  { %736 = vmatpush1.msra.mxu0 %v2931_v48  ;;  %807 = vmatpush1.msra.mxu1 %v2936_v49 }
 0x141   :  { %737 = vmatprep.subr.mxu0 %v2943_v50  ;;  %808 = vmatprep.subr.mxu1 %v2948_v51 }
 0x142   :  { %738 = vmatpush1.msra.mxu0 %v2957_v52  ;;  %809 = vmatpush1.msra.mxu1 %v2962_v53 }
 0x143   :  { %739 = vmatprep.subr.mxu0 %v2974_v55  ;;  %810 = vmatprep.subr.mxu1 %v2979_v56 }
 0x144   :  { %740 = vmatpush1.msra.mxu0 %v2986_v57  ;;  %811 = vmatpush1.msra.mxu1 %v2991_v58 }
 0x145   :  { %741 = vmatprep.subr.mxu0 %v4520_v62  ;;  %812 = vmatprep.subr.mxu1 %v4521_v36 }
 0x146   :  { %742 = vmatpush1.msra.mxu0 %v4522_v54  ;;  %813 = vmatpush1.msra.mxu1 %v4523_v3 }
 0x147   :  { %743 = vmatprep.subr.mxu0 %v4524_v10  ;;  %814 = vmatprep.subr.mxu1 %v4525_v7 }
 0x148   :  { %744 = vmatpush1.msra.mxu0 %v4526_v27  ;;  %815 = vmatpush1.msra.mxu1 %v4527_v5  ;;  %v4545_v5 = vld [vmem:[#allocation25_spill] sm:$0xff] }
 0x149   :  { %745 = vmatprep.subr.mxu0 %v4528_v8  ;;  %816 = vmatprep.subr.mxu1 %v4529_v63 }
 0x14a   :  { %746 = vmatpush1.msra.mxu0 %v4530_v2  ;;  %817 = vmatpush1.msra.mxu1 %v4531_v61  ;;  %v4541_v61 = vld [vmem:[#allocation2_spill] sm:$0xff] }
 0x14b   :  { %747 = vmatprep.subr.mxu0 %v4532_v11  ;;  %818 = vmatprep.subr.mxu1 %v4533_v45  ;;  %v4542_v11 = vld [vmem:[#allocation3_spill] sm:$0xff] }
 0x14c   :  { %748 = vmatpush1.msra.mxu0 %v4534_v1  ;;  %819 = vmatpush1.msra.mxu1 %v4535_v59  ;;  %v4543_v1 = vld [vmem:[#allocation24_spill] sm:$0xff] }
 0x14d   :  { %749 = vmatprep.subr.mxu0 %v4536_v4  ;;  %820 = vmatprep.subr.mxu1 %v4537_v9  ;;  %v4544_v4 = vld [vmem:[#allocation26_spill] sm:$0xff] }
 0x14e   :  { %750 = vmatpush1.msra.mxu0 %v4538_v60  ;;  %783 = vmatprep.mubr.f32.mxu0 %v4539_v0 }
 0x14f   :  { %821 = vmatpush1.msra.mxu1 %v4540_v6  ;;  %854 = vmatprep.mubr.f32.mxu1 %v4539_v0  ;;  %v4546_v0 = vld [vmem:[#allocation27_spill] sm:$0xff] }
 0x150   :  { %889 = vmatprep.subr.mxu0 %v4541_v61  ;;  %960 = vmatprep.subr.mxu1 %v4542_v11 }
 0x1ef   :  { %v615_v45 = vpop.f32.mrf.mxu0  ;;  %v686_v60 = vpop.f32.mrf.mxu1 }
 0x1f0   :  { %v691_v2 = vadd.f32 %v615_v45, %v4543_v1  ;;  %v693_v27 = vadd.f32 %v686_v60, %v4545_v5 }
 0x1f1   :  { %v617_v59 = vpop.f32.mrf.mxu0  ;;  %v688_v6 = vpop.f32.mrf.mxu1 }
 0x1f2   :  { %v2175_v63 = vmul.f32 -1.442695, %v691_v2  ;;  %v692_v8 = vadd.f32 %v617_v59, %v4544_v4  ;;  %v2177_v7 = vmul.f32 -1.442695, %v693_v27  ;;  %v694_v10 = vadd.f32 %v688_v6, %v4546_v0 }
 0x1f4   :  { %2452 = vpow2.f32 %v2175_v63  ;;  %v2176_v9 = vmul.f32 -1.442695, %v692_v8 }
 0x1f6   :  { %2454 = vpow2.f32 %v2176_v9 }
 0x1f7   :  { %2456 = vpow2.f32 %v2177_v7 }
 0x1f8   :  { %2458 = vtanh.f32 %v694_v10 }
 0x201   :  { %v2453_v61 = vpop.eup %2452 }
 0x202   :  { %v704_v3 = vadd.f32 1.0, %v2453_v61  ;;  %v4571_v61 = vld [vmem:[#allocation31_spill] sm:$0xff] }
 0x203   :  { %v2455_v11 = vpop.eup %2454 }
 0x204   :  { %2460 = vrcp.f32 %v704_v3  ;;  %v705_v45 = vadd.f32 1.0, %v2455_v11  ;;  %v2457_v2 = vpop.eup %2456  ;;  %v4570_v3 = vld [vmem:[#allocation29_spill] sm:$0xff] }
 0x205   :  { %v2459_v1 = vpop.eup %2458  ;;  %v706_v4 = vadd.f32 1.0, %v2457_v2 }
 0x206   :  { %2462 = vrcp.f32 %v705_v45 }
 0x207   :  { %2464 = vrcp.f32 %v706_v4 }
 0x211   :  { %v2461_v63 = vpop.eup %2460 }
 0x212   :  { %v715_v8 = vmul.f32 %v2461_v63, %v2459_v1 }
 0x213   :  { %v2463_v59 = vpop.eup %2462 }
 0x214   :  { %v714_v5 = vmul.f32 %v2463_v59, %v3300_v18  ;;  %v2465_v6 = vpop.eup %2464 }
 0x216   :  { %v3378_v9 = vadd.f32 %v715_v8, %v714_v5 }
 0x218   :  { %2466 = vtanh.f32 %v3378_v9 }
 0x225   :  { %v2467_v7 = vpop.eup %2466 }
 0x226   :  { %v3381_v27 = vmul.f32 %v2467_v7, %v2465_v6 }
 0x228   :  { %4547 = vst [vmem:[#allocation4_spill] sm:$0xff] %v3381_v27  ;;  %784 = vmatmul.mubr.f32.vlgmr.msra.gmra.mxu0 %v3381_v27  ;;  %855 = vmatmul.mubr.f32.vlgmr.msra.gmra.mxu1 %v3381_v27  ;;  %v3626_v27 = vld [vmem:[%s4365_s1 + $0x170] sm:$0xff] }
 0x229   :  { %890 = vmatpush1.msra.mxu0 %v2711_v12  ;;  %961 = vmatpush1.msra.mxu1 %v2716_v13  ;;  %v4548_v12 = vld [vmem:[#allocation7_spill] sm:$0xff]  ;;  %v4549_v13 = vld [vmem:[#allocation8_spill] sm:$0xff] }
 0x22a   :  { %891 = vmatprep.subr.mxu0 %v2723_v14  ;;  %962 = vmatprep.subr.mxu1 %v2728_v15  ;;  %v4550_v14 = vld [vmem:[#allocation9_spill] sm:$0xff]  ;;  %v4551_v15 = vld [vmem:[#allocation10_spill] sm:$0xff] }
 0x22b   :  { %892 = vmatpush1.msra.mxu0 %v2737_v16  ;;  %963 = vmatpush1.msra.mxu1 %v2742_v17  ;;  %v4552_v16 = vld [vmem:[#allocation11_spill] sm:$0xff]  ;;  %v4553_v17 = vld [vmem:[#allocation12_spill] sm:$0xff] }
 0x22c   :  { %893 = vmatprep.subr.mxu0 %v2754_v19  ;;  %964 = vmatprep.subr.mxu1 %v2759_v20  ;;  %v4554_v19 = vld [vmem:[#allocation13_spill] sm:$0xff]  ;;  %v4555_v20 = vld [vmem:[#allocation14_spill] sm:$0xff] }
 0x22d   :  { %894 = vmatpush1.msra.mxu0 %v2766_v21  ;;  %965 = vmatpush1.msra.mxu1 %v2771_v22  ;;  %v4556_v21 = vld [vmem:[#allocation15_spill] sm:$0xff]  ;;  %v4557_v22 = vld [vmem:[#allocation16_spill] sm:$0xff] }
 0x22e   :  { %895 = vmatprep.subr.mxu0 %v2778_v23  ;;  %966 = vmatprep.subr.mxu1 %v2783_v24  ;;  %v4558_v23 = vld [vmem:[#allocation17_spill] sm:$0xff]  ;;  %v4559_v24 = vld [vmem:[#allocation18_spill] sm:$0xff] }
 0x22f   :  { %896 = vmatpush1.msra.mxu0 %v2792_v25  ;;  %967 = vmatpush1.msra.mxu1 %v2797_v26  ;;  %v4560_v25 = vld [vmem:[#allocation19_spill] sm:$0xff]  ;;  %v4561_v26 = vld [vmem:[#allocation20_spill] sm:$0xff] }
 0x230   :  { %897 = vmatprep.subr.mxu0 %v2809_v28  ;;  %968 = vmatprep.subr.mxu1 %v2814_v29  ;;  %v4562_v28 = vld [vmem:[#allocation21_spill] sm:$0xff]  ;;  %v4563_v29 = vld [vmem:[#allocation22_spill] sm:$0xff] }
 0x231   :  { %898 = vmatpush1.msra.mxu0 %v2821_v30  ;;  %969 = vmatpush1.msra.mxu1 %v2826_v31  ;;  %v4564_v30 = vmov 0.0   ;;  %v4565_v31 = vld [vmem:[#allocation23_spill] sm:$0xff] }
 0x232   :  { %899 = vmatprep.subr.mxu0 %v2833_v32  ;;  %970 = vmatprep.subr.mxu1 %v2838_v33  ;;  %v3452_v32 = vld [vmem:[%s4365_s1 + $0x228] sm:$0xff]  ;;  %v3458_v33 = vld [vmem:[%s4365_s1 + $0x238] sm:$0xff] }
 0x233   :  { %900 = vmatpush1.msra.mxu0 %v2847_v34  ;;  %971 = vmatpush1.msra.mxu1 %v2852_v35  ;;  %4566 = vst [vmem:[#allocation5_spill] sm:$0xff] %v3452_v32  ;;  %4567 = vst [vmem:[#allocation6_spill] sm:$0xff] %v3458_v33  ;;  %v4568_v35 = vld [vmem:[#allocation28_spill] sm:$0xff] }
 0x234   :  { %901 = vmatprep.subr.mxu0 %v2864_v37  ;;  %972 = vmatprep.subr.mxu1 %v2869_v38 }
 0x235   :  { %902 = vmatpush1.msra.mxu0 %v2876_v39  ;;  %973 = vmatpush1.msra.mxu1 %v2881_v40  ;;  %v4569_v40 = vld [vmem:[#allocation30_spill] sm:$0xff] }
 0x236   :  { %903 = vmatprep.subr.mxu0 %v2888_v41  ;;  %974 = vmatprep.subr.mxu1 %v2893_v42 }
 0x237   :  { %904 = vmatpush1.msra.mxu0 %v2902_v43  ;;  %975 = vmatpush1.msra.mxu1 %v2907_v44 }
 0x238   :  { %905 = vmatprep.subr.mxu0 %v2919_v46  ;;  %976 = vmatprep.subr.mxu1 %v2924_v47 }
 0x239   :  { %906 = vmatpush1.msra.mxu0 %v2931_v48  ;;  %977 = vmatpush1.msra.mxu1 %v2936_v49 }
 0x23a   :  { %907 = vmatprep.subr.mxu0 %v2943_v50  ;;  %978 = vmatprep.subr.mxu1 %v2948_v51 }
 0x23b   :  { %908 = vmatpush1.msra.mxu0 %v2957_v52  ;;  %979 = vmatpush1.msra.mxu1 %v2962_v53 }
 0x23c   :  { %909 = vmatprep.subr.mxu0 %v2974_v55  ;;  %980 = vmatprep.subr.mxu1 %v2979_v56 }
 0x23d   :  { %910 = vmatpush1.msra.mxu0 %v2986_v57  ;;  %981 = vmatpush1.msra.mxu1 %v2991_v58 }
 0x23e   :  { %911 = vmatprep.subr.mxu0 %v4520_v62  ;;  %982 = vmatprep.subr.mxu1 %v4521_v36 }
 0x23f   :  { %912 = vmatpush1.msra.mxu0 %v4522_v54  ;;  %983 = vmatpush1.msra.mxu1 %v4548_v12 }
 0x240   :  { %913 = vmatprep.subr.mxu0 %v4549_v13  ;;  %984 = vmatprep.subr.mxu1 %v4550_v14 }
 0x241   :  { %914 = vmatpush1.msra.mxu0 %v4551_v15  ;;  %985 = vmatpush1.msra.mxu1 %v4552_v16 }
 0x242   :  { %915 = vmatprep.subr.mxu0 %v4553_v17  ;;  %986 = vmatprep.subr.mxu1 %v4554_v19 }
 0x243   :  { %916 = vmatpush1.msra.mxu0 %v4555_v20  ;;  %987 = vmatpush1.msra.mxu1 %v4556_v21 }
 0x244   :  { %917 = vmatprep.subr.mxu0 %v4557_v22  ;;  %988 = vmatprep.subr.mxu1 %v4558_v23 }
 0x245   :  { %918 = vmatpush1.msra.mxu0 %v4559_v24  ;;  %989 = vmatpush1.msra.mxu1 %v4560_v25 }
 0x246   :  { %919 = vmatprep.subr.mxu0 %v4561_v26  ;;  %990 = vmatprep.subr.mxu1 %v4562_v28 }
 0x247   :  { %920 = vmatpush1.msra.mxu0 %v4563_v29  ;;  %953 = vmatprep.mubr.f32.mxu0 %v4564_v30 }
 0x248   :  { %991 = vmatpush1.msra.mxu1 %v4565_v31  ;;  %1024 = vmatprep.mubr.f32.mxu1 %v4564_v30 }
 0x249   :  { %1059 = vmatprep.subr.mxu0 %v3452_v32  ;;  %1130 = vmatprep.subr.mxu1 %v3458_v33 }
 0x2e8   :  { %v785_v34 = vpop.f32.mrf.mxu0  ;;  %v856_v18 = vpop.f32.mrf.mxu1 }
 0x2e9   :  { %v861_v37 = vadd.f32 %v785_v34, %v4568_v35  ;;  %v863_v10 = vadd.f32 %v856_v18, %v4570_v3  ;;  %v3500_v18 = vld [vmem:[%s4365_s1 + $0x200] sm:$0xff]  ;;  %v3506_v3 = vld [vmem:[%s4365_s1 + $0x210] sm:$0xff] }
 0x2ea   :  { %v787_v38 = vpop.f32.mrf.mxu0  ;;  %v858_v60 = vpop.f32.mrf.mxu1 }
 0x2eb   :  { %v2178_v39 = vmul.f32 -1.442695, %v861_v37  ;;  %v862_v41 = vadd.f32 %v787_v38, %v4569_v40  ;;  %v2180_v0 = vmul.f32 -1.442695, %v863_v10  ;;  %v864_v11 = vadd.f32 %v858_v60, %v4571_v61  ;;  %v3476_v40 = vld [vmem:[%s4365_s1 + $0x220] sm:$0xff]  ;;  %v3512_v10 = vld [vmem:[%s4365_s1 + $0x1e8] sm:$0xff] }
 0x2ec   :  { %v3518_v60 = vld [vmem:[%s4365_s1 + $0x1f8] sm:$0xff]  ;;  %v3530_v61 = vld [vmem:[%s4365_s1 + $0x1f0] sm:$0xff] }
 0x2ed   :  { %2468 = vpow2.f32 %v2178_v39  ;;  %v2179_v42 = vmul.f32 -1.442695, %v862_v41  ;;  %v3488_v41 = vld [vmem:[%s4365_s1 + $0x208] sm:$0xff] }
 0x2ef   :  { %2470 = vpow2.f32 %v2179_v42  ;;  %v3494_v42 = vld [vmem:[%s4365_s1 + $0x218] sm:$0xff] }
 0x2f0   :  { %2472 = vpow2.f32 %v2180_v0  ;;  %v3524_v0 = vld [vmem:[%s4365_s1 + $0x1e0] sm:$0xff] }
 0x2f1   :  { %2474 = vtanh.f32 %v864_v11  ;;  %v3536_v11 = vld [vmem:[%s4365_s1 + $0x1c8] sm:$0xff] }
 0x2fa   :  { %v2469_v45 = vpop.eup %2468 }
 0x2fb   :  { %v874_v2 = vadd.f32 1.0, %v2469_v45  ;;  %v3542_v45 = vld [vmem:[%s4365_s1 + $0x1d8] sm:$0xff] }
 0x2fc   :  { %v2471_v1 = vpop.eup %2470 }
 0x2fd   :  { %2476 = vrcp.f32 %v874_v2  ;;  %v875_v63 = vadd.f32 1.0, %v2471_v1  ;;  %v2473_v8 = vpop.eup %2472  ;;  %v3548_v2 = vld [vmem:[%s4365_s1 + $0x1c0] sm:$0xff]  ;;  %v3554_v1 = vld [vmem:[%s4365_s1 + $0x1d0] sm:$0xff] }
 0x2fe   :  { %v2475_v59 = vpop.eup %2474  ;;  %v876_v7 = vadd.f32 1.0, %v2473_v8  ;;  %v3566_v8 = vld [vmem:[%s4365_s1 + $0x1b8] sm:$0xff] }
 0x2ff   :  { %2478 = vrcp.f32 %v875_v63  ;;  %v3560_v63 = vld [vmem:[%s4365_s1 + $0x1a8] sm:$0xff] }
 0x300   :  { %2480 = vrcp.f32 %v876_v7  ;;  %v3596_v7 = vld [vmem:[%s4365_s1 + $0x180] sm:$0xff] }
 0x30a   :  { %v2477_v4 = vpop.eup %2476 }
 0x30b   :  { %v885_v5 = vmul.f32 %v2477_v4, %v2475_v59  ;;  %v3572_v59 = vld [vmem:[%s4365_s1 + $0x1a0] sm:$0xff]  ;;  %v3578_v4 = vld [vmem:[%s4365_s1 + $0x1b0] sm:$0xff] }
 0x30c   :  { %v2479_v6 = vpop.eup %2478 }
 0x30d   :  { %v884_v34 = vmul.f32 %v2479_v6, %v3378_v9  ;;  %v2481_v37 = vpop.eup %2480  ;;  %v3482_v9 = vld [vmem:[%s4365_s1 + $0x230] sm:$0xff]  ;;  %v3590_v6 = vld [vmem:[%s4365_s1 + $0x198] sm:$0xff] }
 0x30f   :  { %v3466_v35 = vadd.f32 %v885_v5, %v884_v34  ;;  %v3584_v5 = vld [vmem:[%s4365_s1 + $0x188] sm:$0xff]  ;;  %v3602_v34 = vld [vmem:[%s4365_s1 + $0x190] sm:$0xff] }
 0x311   :  { %2482 = vtanh.f32 %v3466_v35 }
 0x31e   :  { %v2483_v38 = vpop.eup %2482 }
 0x31f   :  { %v3469_v39 = vmul.f32 %v2483_v38, %v2481_v37  ;;  %v3608_v37 = vld [vmem:[%s4365_s1 + $0x168] sm:$0xff]  ;;  %v3614_v38 = vld [vmem:[%s4365_s1 + $0x178] sm:$0xff] }
 0x320   :  { %4573 = vst [vmem:[#allocation3_spill] sm:$0xff] %v3608_v37  ;;  %4574 = vst [vmem:[#allocation24_spill] sm:$0xff] %v3614_v38 }
 0x321   :  { %4572 = vst [vmem:[#allocation2_spill] sm:$0xff] %v3469_v39  ;;  %954 = vmatmul.mubr.f32.vlgmr.msra.gmra.mxu0 %v3469_v39  ;;  %1025 = vmatmul.mubr.f32.vlgmr.msra.gmra.mxu1 %v3469_v39  ;;  %v3620_v39 = vld [vmem:[%s4365_s1 + $0x160] sm:$0xff] }
 0x322   :  { %1060 = vmatpush1.msra.mxu0 %v3476_v40  ;;  %1131 = vmatpush1.msra.mxu1 %v3482_v9 }
 0x323   :  { %1061 = vmatprep.subr.mxu0 %v3488_v41  ;;  %1132 = vmatprep.subr.mxu1 %v3494_v42 }
 0x324   :  { %1062 = vmatpush1.msra.mxu0 %v3500_v18  ;;  %1133 = vmatpush1.msra.mxu1 %v3506_v3 }
 0x325   :  { %1063 = vmatprep.subr.mxu0 %v3512_v10  ;;  %1134 = vmatprep.subr.mxu1 %v3518_v60 }
 0x326   :  { %1064 = vmatpush1.msra.mxu0 %v3524_v0  ;;  %1135 = vmatpush1.msra.mxu1 %v3530_v61 }
 0x327   :  { %1065 = vmatprep.subr.mxu0 %v3536_v11  ;;  %1136 = vmatprep.subr.mxu1 %v3542_v45 }
 0x328   :  { %1066 = vmatpush1.msra.mxu0 %v3548_v2  ;;  %1137 = vmatpush1.msra.mxu1 %v3554_v1 }
 0x329   :  { %1067 = vmatprep.subr.mxu0 %v3560_v63  ;;  %1138 = vmatprep.subr.mxu1 %v3566_v8 }
 0x32a   :  { %1068 = vmatpush1.msra.mxu0 %v3572_v59  ;;  %1139 = vmatpush1.msra.mxu1 %v3578_v4 }
 0x32b   :  { %1069 = vmatprep.subr.mxu0 %v3584_v5  ;;  %1140 = vmatprep.subr.mxu1 %v3590_v6 }
 0x32c   :  { %1070 = vmatpush1.msra.mxu0 %v3596_v7  ;;  %1141 = vmatpush1.msra.mxu1 %v3602_v34 }
 0x32d   :  { %1071 = vmatprep.subr.mxu0 %v3608_v37  ;;  %1142 = vmatprep.subr.mxu1 %v3614_v38  ;;  %v3632_v37 = vld [vmem:[%s4365_s1 + $0x148] sm:$0xff]  ;;  %v3638_v38 = vld [vmem:[%s4365_s1 + $0x158] sm:$0xff] }
 0x32e   :  { %1072 = vmatpush1.msra.mxu0 %v3620_v39  ;;  %1143 = vmatpush1.msra.mxu1 %v3626_v27 }
 0x32f   :  { %1073 = vmatprep.subr.mxu0 %v3632_v37  ;;  %1144 = vmatprep.subr.mxu1 %v3638_v38 }
 0x330   :  { %1074 = vmatpush1.msra.mxu0 %v2902_v43  ;;  %1145 = vmatpush1.msra.mxu1 %v2907_v44  ;;  %v4575_v44 = vld [vmem:[#allocation32_spill] sm:$0xff] }
 0x331   :  { %1075 = vmatprep.subr.mxu0 %v2919_v46  ;;  %1146 = vmatprep.subr.mxu1 %v2924_v47 }
 0x332   :  { %1076 = vmatpush1.msra.mxu0 %v2931_v48  ;;  %1147 = vmatpush1.msra.mxu1 %v2936_v49  ;;  %v4576_v49 = vld [vmem:[#allocation34_spill] sm:$0xff] }
 0x333   :  { %1077 = vmatprep.subr.mxu0 %v2943_v50  ;;  %1148 = vmatprep.subr.mxu1 %v2948_v51 }
 0x334   :  { %1078 = vmatpush1.msra.mxu0 %v2957_v52  ;;  %1149 = vmatpush1.msra.mxu1 %v2962_v53  ;;  %v4577_v53 = vld [vmem:[#allocation33_spill] sm:$0xff] }
 0x335   :  { %1079 = vmatprep.subr.mxu0 %v2974_v55  ;;  %1150 = vmatprep.subr.mxu1 %v2979_v56 }
 0x336   :  { %1080 = vmatpush1.msra.mxu0 %v2986_v57  ;;  %1151 = vmatpush1.msra.mxu1 %v2991_v58  ;;  %v4578_v58 = vld [vmem:[#allocation35_spill] sm:$0xff] }
 0x337   :  { %1081 = vmatprep.subr.mxu0 %v4520_v62  ;;  %1152 = vmatprep.subr.mxu1 %v4521_v36 }
 0x338   :  { %1082 = vmatpush1.msra.mxu0 %v4522_v54  ;;  %1153 = vmatpush1.msra.mxu1 %v4548_v12 }
 0x339   :  { %1083 = vmatprep.subr.mxu0 %v4549_v13  ;;  %1154 = vmatprep.subr.mxu1 %v4550_v14 }
 0x33a   :  { %1084 = vmatpush1.msra.mxu0 %v4551_v15  ;;  %1155 = vmatpush1.msra.mxu1 %v4552_v16 }
 0x33b   :  { %1085 = vmatprep.subr.mxu0 %v4553_v17  ;;  %1156 = vmatprep.subr.mxu1 %v4554_v19 }
 0x33c   :  { %1086 = vmatpush1.msra.mxu0 %v4555_v20  ;;  %1157 = vmatpush1.msra.mxu1 %v4556_v21 }
 0x33d   :  { %1087 = vmatprep.subr.mxu0 %v4557_v22  ;;  %1158 = vmatprep.subr.mxu1 %v4558_v23 }
 0x33e   :  { %1088 = vmatpush1.msra.mxu0 %v4559_v24  ;;  %1159 = vmatpush1.msra.mxu1 %v4560_v25 }
 0x33f   :  { %1089 = vmatprep.subr.mxu0 %v4561_v26  ;;  %1160 = vmatprep.subr.mxu1 %v4562_v28  ;;  %v4580_v26 = vld [vmem:[#allocation3_spill] sm:$0xff]  ;;  %v4581_v28 = vld [vmem:[#allocation24_spill] sm:$0xff] }
 0x340   :  { %1090 = vmatpush1.msra.mxu0 %v4563_v29  ;;  %1123 = vmatprep.mubr.f32.mxu0 %v4564_v30  ;;  %v3722_v29 = vld [vmem:[%s4365_s1 + $0x140] sm:$0xff] }
 0x341   :  { %1161 = vmatpush1.msra.mxu1 %v4565_v31  ;;  %1194 = vmatprep.mubr.f32.mxu1 %v4564_v30  ;;  %v3728_v31 = vld [vmem:[%s4365_s1 + $0x150] sm:$0xff] }
 0x342   :  { %1229 = vmatprep.subr.mxu0 %v3452_v32  ;;  %1300 = vmatprep.subr.mxu1 %v3458_v33 }
 0x3e1   :  { %v955_v43 = vpop.f32.mrf.mxu0  ;;  %v1026_v52 = vpop.f32.mrf.mxu1 }
 0x3e2   :  { %v1031_v46 = vadd.f32 %v955_v43, %v4575_v44  ;;  %v1033_v55 = vadd.f32 %v1026_v52, %v4577_v53  ;;  %v3740_v43 = vld [vmem:[%s4365_s1 + $0x138] sm:$0xff]  ;;  %v3746_v44 = vld [vmem:[%s4365_s1 + $0x120] sm:$0xff] }
 0x3e3   :  { %v957_v47 = vpop.f32.mrf.mxu0  ;;  %v1028_v56 = vpop.f32.mrf.mxu1  ;;  %v3788_v52 = vld [vmem:[%s4365_s1 + $0xf8] sm:$0xff]  ;;  %v3794_v53 = vld [vmem:[%s4365_s1 + $0xe0] sm:$0xff] }
 0x3e4   :  { %v2181_v48 = vmul.f32 -1.442695, %v1031_v46  ;;  %v1032_v50 = vadd.f32 %v957_v47, %v4576_v49  ;;  %v2183_v57 = vmul.f32 -1.442695, %v1033_v55  ;;  %v1034_v62 = vadd.f32 %v1028_v56, %v4578_v58  ;;  %v3752_v46 = vld [vmem:[%s4365_s1 + $0x130] sm:$0xff]  ;;  %v3758_v47 = vld [vmem:[%s4365_s1 + $0x108] sm:$0xff] }
 0x3e5   :  { %v3770_v49 = vld [vmem:[%s4365_s1 + $0x100] sm:$0xff]  ;;  %v3800_v55 = vld [vmem:[%s4365_s1 + $0xf0] sm:$0xff]  ;;  %v3806_v56 = vld [vmem:[%s4365_s1 + $0xc8] sm:$0xff] }
 0x3e6   :  { %2484 = vpow2.f32 %v2181_v48  ;;  %v2182_v51 = vmul.f32 -1.442695, %v1032_v50  ;;  %v3764_v48 = vld [vmem:[%s4365_s1 + $0x118] sm:$0xff]  ;;  %v3776_v50 = vld [vmem:[%s4365_s1 + $0x110] sm:$0xff]  ;;  %v3818_v58 = vld [vmem:[%s4365_s1 + $0xc0] sm:$0xff] }
 0x3e8   :  { %2486 = vpow2.f32 %v2182_v51  ;;  %v3782_v51 = vld [vmem:[%s4365_s1 + $0xe8] sm:$0xff] }
 0x3e9   :  { %2488 = vpow2.f32 %v2183_v57  ;;  %v3812_v57 = vld [vmem:[%s4365_s1 + $0xd8] sm:$0xff] }
 0x3ea   :  { %2490 = vtanh.f32 %v1034_v62  ;;  %v3824_v62 = vld [vmem:[%s4365_s1 + $0xd0] sm:$0xff] }
 0x3eb   :  { %4582 = vst [vmem:[#allocation25_spill] sm:$0xff] %v3824_v62 }
 0x3f3   :  { %v2485_v36 = vpop.eup %2484 }
 0x3f4   :  { %v1044_v54 = vadd.f32 1.0, %v2485_v36  ;;  %v3830_v36 = vld [vmem:[%s4365_s1 + $0xa8] sm:$0xff] }
 0x3f5   :  { %v2487_v12 = vpop.eup %2486  ;;  %4583 = vst [vmem:[#allocation27_spill] sm:$0xff] %v3830_v36 }
 0x3f6   :  { %2492 = vrcp.f32 %v1044_v54  ;;  %v1045_v13 = vadd.f32 1.0, %v2487_v12  ;;  %v2489_v14 = vpop.eup %2488  ;;  %v3836_v54 = vld [vmem:[%s4365_s1 + $0xb8] sm:$0xff]  ;;  %v3842_v12 = vld [vmem:[%s4365_s1 + $0xa0] sm:$0xff] }
 0x3f7   :  { %v2491_v15 = vpop.eup %2490  ;;  %v1046_v20 = vadd.f32 1.0, %v2489_v14  ;;  %4584 = vst [vmem:[#allocation7_spill] sm:$0xff] %v3836_v54  ;;  %4585 = vst [vmem:[#allocation8_spill] sm:$0xff] %v3842_v12  ;;  %v3854_v14 = vld [vmem:[%s4365_s1 + $0x88] sm:$0xff] }
 0x3f8   :  { %2494 = vrcp.f32 %v1045_v13  ;;  %v3848_v13 = vld [vmem:[%s4365_s1 + $0xb0] sm:$0xff]  ;;  %4587 = vst [vmem:[#allocation10_spill] sm:$0xff] %v3854_v14 }
 0x3f9   :  { %2496 = vrcp.f32 %v1046_v20  ;;  %4586 = vst [vmem:[#allocation9_spill] sm:$0xff] %v3848_v13  ;;  %v3884_v20 = vld [vmem:[%s4365_s1 + $0x78] sm:$0xff] }
 0x3fa   :  { %4592 = vst [vmem:[#allocation15_spill] sm:$0xff] %v3884_v20 }
 0x403   :  { %v2493_v16 = vpop.eup %2492 }
 0x404   :  { %v1055_v17 = vmul.f32 %v2493_v16, %v2491_v15  ;;  %v3860_v15 = vld [vmem:[%s4365_s1 + $0x98] sm:$0xff]  ;;  %v3866_v16 = vld [vmem:[%s4365_s1 + $0x80] sm:$0xff] }
 0x405   :  { %v2495_v19 = vpop.eup %2494  ;;  %4588 = vst [vmem:[#allocation11_spill] sm:$0xff] %v3860_v15  ;;  %4589 = vst [vmem:[#allocation12_spill] sm:$0xff] %v3866_v16 }
 0x406   :  { %v1054_v21 = vmul.f32 %v2495_v19, %v3466_v35  ;;  %v2497_v23 = vpop.eup %2496  ;;  %v3734_v35 = vld [vmem:[%s4365_s1 + $0x128] sm:$0xff] }
 0x407   :  { %v3878_v19 = vld [vmem:[%s4365_s1 + $0x68] sm:$0xff] }
 0x408   :  { %v3684_v22 = vadd.f32 %v1055_v17, %v1054_v21  ;;  %v3872_v17 = vld [vmem:[%s4365_s1 + $0x90] sm:$0xff]  ;;  %4591 = vst [vmem:[#allocation14_spill] sm:$0xff] %v3878_v19  ;;  %v3890_v21 = vld [vmem:[%s4365_s1 + $0x60] sm:$0xff] }
 0x409   :  { %4590 = vst [vmem:[#allocation13_spill] sm:$0xff] %v3872_v17  ;;  %4593 = vst [vmem:[#allocation16_spill] sm:$0xff] %v3890_v21 }
 0x40a   :  { %2498 = vtanh.f32 %v3684_v22 }
 0x417   :  { %v2499_v24 = vpop.eup %2498 }
 0x418   :  { %v3687_v25 = vmul.f32 %v2499_v24, %v2497_v23  ;;  %v3896_v23 = vld [vmem:[%s4365_s1 + $0x70] sm:$0xff]  ;;  %v3902_v24 = vld [vmem:[%s4365_s1 + $0x48] sm:$0xff] }
 0x419   :  { %4594 = vst [vmem:[#allocation17_spill] sm:$0xff] %v3896_v23  ;;  %4595 = vst [vmem:[#allocation18_spill] sm:$0xff] %v3902_v24 }
 0x41a   :  { %4579 = vst [vmem:[#allocation26_spill] sm:$0xff] %v3687_v25  ;;  %1124 = vmatmul.mubr.f32.vlgmr.msra.gmra.mxu0 %v3687_v25  ;;  %1195 = vmatmul.mubr.f32.vlgmr.msra.gmra.mxu1 %v3687_v25  ;;  %v3908_v25 = vld [vmem:[%s4365_s1 + $0x58] sm:$0xff] }
 0x41b   :  { %1230 = vmatpush1.msra.mxu0 %v3476_v40  ;;  %1301 = vmatpush1.msra.mxu1 %v3482_v9  ;;  %4596 = vst [vmem:[#allocation19_spill] sm:$0xff] %v3908_v25 }
 0x41c   :  { %1231 = vmatprep.subr.mxu0 %v3488_v41  ;;  %1302 = vmatprep.subr.mxu1 %v3494_v42 }
 0x41d   :  { %1232 = vmatpush1.msra.mxu0 %v3500_v18  ;;  %1303 = vmatpush1.msra.mxu1 %v3506_v3 }
 0x41e   :  { %1233 = vmatprep.subr.mxu0 %v3512_v10  ;;  %1304 = vmatprep.subr.mxu1 %v3518_v60 }
 0x41f   :  { %1234 = vmatpush1.msra.mxu0 %v3524_v0  ;;  %1305 = vmatpush1.msra.mxu1 %v3530_v61 }
 0x420   :  { %1235 = vmatprep.subr.mxu0 %v3536_v11  ;;  %1306 = vmatprep.subr.mxu1 %v3542_v45 }
 0x421   :  { %1236 = vmatpush1.msra.mxu0 %v3548_v2  ;;  %1307 = vmatpush1.msra.mxu1 %v3554_v1 }
 0x422   :  { %1237 = vmatprep.subr.mxu0 %v3560_v63  ;;  %1308 = vmatprep.subr.mxu1 %v3566_v8 }
 0x423   :  { %1238 = vmatpush1.msra.mxu0 %v3572_v59  ;;  %1309 = vmatpush1.msra.mxu1 %v3578_v4 }
 0x424   :  { %1239 = vmatprep.subr.mxu0 %v3584_v5  ;;  %1310 = vmatprep.subr.mxu1 %v3590_v6 }
 0x425   :  { %1240 = vmatpush1.msra.mxu0 %v3596_v7  ;;  %1311 = vmatpush1.msra.mxu1 %v3602_v34 }
 0x426   :  { %1241 = vmatprep.subr.mxu0 %v4580_v26  ;;  %1312 = vmatprep.subr.mxu1 %v4581_v28 }
 0x427   :  { %1242 = vmatpush1.msra.mxu0 %v3620_v39  ;;  %1313 = vmatpush1.msra.mxu1 %v3626_v27 }
 0x428   :  { %1243 = vmatprep.subr.mxu0 %v3632_v37  ;;  %1314 = vmatprep.subr.mxu1 %v3638_v38 }
 0x429   :  { %1244 = vmatpush1.msra.mxu0 %v3722_v29  ;;  %1315 = vmatpush1.msra.mxu1 %v3728_v31 }
 0x42a   :  { %1245 = vmatprep.subr.mxu0 %v3734_v35  ;;  %1316 = vmatprep.subr.mxu1 %v3740_v43 }
 0x42b   :  { %1246 = vmatpush1.msra.mxu0 %v3746_v44  ;;  %1317 = vmatpush1.msra.mxu1 %v3752_v46 }
 0x42c   :  { %1247 = vmatprep.subr.mxu0 %v3758_v47  ;;  %1318 = vmatprep.subr.mxu1 %v3764_v48 }
 0x42d   :  { %1248 = vmatpush1.msra.mxu0 %v3770_v49  ;;  %1319 = vmatpush1.msra.mxu1 %v3776_v50 }
 0x42e   :  { %1249 = vmatprep.subr.mxu0 %v3782_v51  ;;  %1320 = vmatprep.subr.mxu1 %v3788_v52 }
 0x42f   :  { %1250 = vmatpush1.msra.mxu0 %v3794_v53  ;;  %1321 = vmatpush1.msra.mxu1 %v3800_v55 }
 0x430   :  { %1251 = vmatprep.subr.mxu0 %v3806_v56  ;;  %1322 = vmatprep.subr.mxu1 %v3812_v57 }
 0x431   :  { %1252 = vmatpush1.msra.mxu0 %v3818_v58  ;;  %1323 = vmatpush1.msra.mxu1 %v3824_v62 }
 0x432   :  { %1253 = vmatprep.subr.mxu0 %v3830_v36  ;;  %1324 = vmatprep.subr.mxu1 %v3836_v54 }
 0x433   :  { %1254 = vmatpush1.msra.mxu0 %v3842_v12  ;;  %1325 = vmatpush1.msra.mxu1 %v3848_v13  ;;  %v4601_v13 = vld [vmem:[#allocation37_spill] sm:$0xff] }
 0x434   :  { %1255 = vmatprep.subr.mxu0 %v3854_v14  ;;  %1326 = vmatprep.subr.mxu1 %v3860_v15 }
 0x435   :  { %1256 = vmatpush1.msra.mxu0 %v3866_v16  ;;  %1327 = vmatpush1.msra.mxu1 %v3872_v17  ;;  %v4600_v17 = vld [vmem:[#allocation38_spill] sm:$0xff] }
 0x436   :  { %1257 = vmatprep.subr.mxu0 %v3878_v19  ;;  %1328 = vmatprep.subr.mxu1 %v3884_v20 }
 0x437   :  { %1258 = vmatpush1.msra.mxu0 %v3890_v21  ;;  %1329 = vmatpush1.msra.mxu1 %v3896_v23  ;;  %v3914_v21 = vld [vmem:[%s4365_s1 + $0x40] sm:$0xff]  ;;  %v4599_v23 = vld [vmem:[#allocation36_spill] sm:$0xff] }
 0x438   :  { %1259 = vmatprep.subr.mxu0 %v3902_v24  ;;  %1330 = vmatprep.subr.mxu1 %v3908_v25  ;;  %4597 = vst [vmem:[#allocation20_spill] sm:$0xff] %v3914_v21  ;;  %v3921_v24 = vld [vmem:[%s4365_s1 + $0x50] sm:$0xff] }
 0x439   :  { %1260 = vmatpush1.msra.mxu0 %v3914_v21  ;;  %1293 = vmatprep.mubr.f32.mxu0 %v4564_v30  ;;  %4598 = vst [vmem:[#allocation21_spill] sm:$0xff] %v3921_v24 }
 0x43a   :  { %1331 = vmatpush1.msra.mxu1 %v3921_v24  ;;  %1364 = vmatprep.mubr.f32.mxu1 %v4564_v30  ;;  %v4602_v30 = vld [vmem:[#allocation39_spill] sm:$0xff] }
 0x43b   :  { %1399 = vmatprep.subr.mxu0 %v3452_v32  ;;  %1470 = vmatprep.subr.mxu1 %v3458_v33 }
 0x4da   :  { %v1125_v25 = vpop.f32.mrf.mxu0  ;;  %v1196_v14 = vpop.f32.mrf.mxu1 }
 0x4db   :  { %v1201_v20 = vadd.f32 %v1125_v25, %v4599_v23  ;;  %v1203_v12 = vadd.f32 %v1196_v14, %v4601_v13  ;;  %v4609_v23 = vld [vmem:[#allocation10_spill] sm:$0xff] }
 0x4dc   :  { %v1127_v19 = vpop.f32.mrf.mxu0  ;;  %v1198_v24 = vpop.f32.mrf.mxu1 }
 0x4dd   :  { %v2184_v21 = vmul.f32 -1.442695, %v1201_v20  ;;  %v1202_v16 = vadd.f32 %v1127_v19, %v4600_v17  ;;  %v2186_v54 = vmul.f32 -1.442695, %v1203_v12  ;;  %v1204_v36 = vadd.f32 %v1198_v24, %v4602_v30  ;;  %v4608_v12 = vld [vmem:[#allocation9_spill] sm:$0xff]  ;;  %v4610_v24 = vld [vmem:[#allocation11_spill] sm:$0xff] }
 0x4df   :  { %2500 = vpow2.f32 %v2184_v21  ;;  %v2185_v15 = vmul.f32 -1.442695, %v1202_v16 }
 0x4e1   :  { %2502 = vpow2.f32 %v2185_v15 }
 0x4e2   :  { %2504 = vpow2.f32 %v2186_v54 }
 0x4e3   :  { %2506 = vtanh.f32 %v1204_v36  ;;  %v4607_v36 = vld [vmem:[#allocation8_spill] sm:$0xff] }
 0x4ec   :  { %v2501_v32 = vpop.eup %2500 }
 0x4ed   :  { %v1214_v62 = vadd.f32 1.0, %v2501_v32 }
 0x4ee   :  { %v2503_v33 = vpop.eup %2502 }
 0x4ef   :  { %2508 = vrcp.f32 %v1214_v62  ;;  %v1215_v25 = vadd.f32 1.0, %v2503_v33  ;;  %v2505_v20 = vpop.eup %2504  ;;  %v4604_v33 = vld [vmem:[#allocation25_spill] sm:$0xff]  ;;  %v4606_v62 = vld [vmem:[#allocation7_spill] sm:$0xff] }
 0x4f0   :  { %v2507_v17 = vpop.eup %2506  ;;  %v1216_v21 = vadd.f32 1.0, %v2505_v20  ;;  %v4612_v20 = vld [vmem:[#allocation13_spill] sm:$0xff] }
 0x4f1   :  { %2510 = vrcp.f32 %v1215_v25  ;;  %v4611_v25 = vld [vmem:[#allocation12_spill] sm:$0xff] }
 0x4f2   :  { %2512 = vrcp.f32 %v1216_v21  ;;  %v4617_v21 = vld [vmem:[#allocation18_spill] sm:$0xff] }
 0x4fc   :  { %v2509_v19 = vpop.eup %2508 }
 0x4fd   :  { %v1225_v16 = vmul.f32 %v2509_v19, %v2507_v17  ;;  %v4613_v17 = vld [vmem:[#allocation14_spill] sm:$0xff]  ;;  %v4614_v19 = vld [vmem:[#allocation15_spill] sm:$0xff] }
 0x4fe   :  { %v2511_v15 = vpop.eup %2510 }
 0x4ff   :  { %v1224_v13 = vmul.f32 %v2511_v15, %v3684_v22  ;;  %v2513_v30 = vpop.eup %2512  ;;  %v4605_v22 = vld [vmem:[#allocation27_spill] sm:$0xff]  ;;  %v4616_v15 = vld [vmem:[#allocation17_spill] sm:$0xff] }
 0x501   :  { %v3932_v14 = vadd.f32 %v1225_v16, %v1224_v13  ;;  %v4615_v16 = vld [vmem:[#allocation16_spill] sm:$0xff]  ;;  %v4618_v13 = vld [vmem:[#allocation19_spill] sm:$0xff] }
 0x503   :  { %2514 = vtanh.f32 %v3932_v14 }
 0x510   :  { %v2515_v32 = vpop.eup %2514 }
 0x511   :  { %v3935_v54 = vmul.f32 %v2515_v32, %v2513_v30  ;;  %v4619_v30 = vld [vmem:[#allocation20_spill] sm:$0xff]  ;;  %v4620_v32 = vmov 0.0  }
 0x513   :  { %4603 = vst [vmem:[#allocation22_spill] sm:$0xff] %v3935_v54  ;;  %1294 = vmatmul.mubr.f32.vlgmr.msra.gmra.mxu0 %v3935_v54  ;;  %1365 = vmatmul.mubr.f32.vlgmr.msra.gmra.mxu1 %v3935_v54  ;;  %v4621_v54 = vld [vmem:[#allocation21_spill] sm:$0xff] }
 0x514   :  { %1400 = vmatpush1.msra.mxu0 %v3476_v40  ;;  %1471 = vmatpush1.msra.mxu1 %v3482_v9 }
 0x515   :  { %1401 = vmatprep.subr.mxu0 %v3488_v41  ;;  %1472 = vmatprep.subr.mxu1 %v3494_v42 }
 0x516   :  { %1402 = vmatpush1.msra.mxu0 %v3500_v18  ;;  %1473 = vmatpush1.msra.mxu1 %v3506_v3 }
 0x517   :  { %1403 = vmatprep.subr.mxu0 %v3512_v10  ;;  %1474 = vmatprep.subr.mxu1 %v3518_v60 }
 0x518   :  { %1404 = vmatpush1.msra.mxu0 %v3524_v0  ;;  %1475 = vmatpush1.msra.mxu1 %v3530_v61 }
 0x519   :  { %1405 = vmatprep.subr.mxu0 %v3536_v11  ;;  %1476 = vmatprep.subr.mxu1 %v3542_v45 }
 0x51a   :  { %1406 = vmatpush1.msra.mxu0 %v3548_v2  ;;  %1477 = vmatpush1.msra.mxu1 %v3554_v1 }
 0x51b   :  { %1407 = vmatprep.subr.mxu0 %v3560_v63  ;;  %1478 = vmatprep.subr.mxu1 %v3566_v8 }
 0x51c   :  { %1408 = vmatpush1.msra.mxu0 %v3572_v59  ;;  %1479 = vmatpush1.msra.mxu1 %v3578_v4 }
 0x51d   :  { %1409 = vmatprep.subr.mxu0 %v3584_v5  ;;  %1480 = vmatprep.subr.mxu1 %v3590_v6 }
 0x51e   :  { %1410 = vmatpush1.msra.mxu0 %v3596_v7  ;;  %1481 = vmatpush1.msra.mxu1 %v3602_v34 }
 0x51f   :  { %1411 = vmatprep.subr.mxu0 %v4580_v26  ;;  %1482 = vmatprep.subr.mxu1 %v4581_v28 }
 0x520   :  { %1412 = vmatpush1.msra.mxu0 %v3620_v39  ;;  %1483 = vmatpush1.msra.mxu1 %v3626_v27 }
 0x521   :  { %1413 = vmatprep.subr.mxu0 %v3632_v37  ;;  %1484 = vmatprep.subr.mxu1 %v3638_v38 }
 0x522   :  { %1414 = vmatpush1.msra.mxu0 %v3722_v29  ;;  %1485 = vmatpush1.msra.mxu1 %v3728_v31 }
 0x523   :  { %1415 = vmatprep.subr.mxu0 %v3734_v35  ;;  %1486 = vmatprep.subr.mxu1 %v3740_v43 }
 0x524   :  { %1416 = vmatpush1.msra.mxu0 %v3746_v44  ;;  %1487 = vmatpush1.msra.mxu1 %v3752_v46 }
 0x525   :  { %1417 = vmatprep.subr.mxu0 %v3758_v47  ;;  %1488 = vmatprep.subr.mxu1 %v3764_v48 }
 0x526   :  { %1418 = vmatpush1.msra.mxu0 %v3770_v49  ;;  %1489 = vmatpush1.msra.mxu1 %v3776_v50 }
 0x527   :  { %1419 = vmatprep.subr.mxu0 %v3782_v51  ;;  %1490 = vmatprep.subr.mxu1 %v3788_v52 }
 0x528   :  { %1420 = vmatpush1.msra.mxu0 %v3794_v53  ;;  %1491 = vmatpush1.msra.mxu1 %v3800_v55 }
 0x529   :  { %1421 = vmatprep.subr.mxu0 %v3806_v56  ;;  %1492 = vmatprep.subr.mxu1 %v3812_v57 }
 0x52a   :  { %1422 = vmatpush1.msra.mxu0 %v3818_v58  ;;  %1493 = vmatpush1.msra.mxu1 %v4604_v33 }
 0x52b   :  { %1423 = vmatprep.subr.mxu0 %v4605_v22  ;;  %1494 = vmatprep.subr.mxu1 %v4606_v62 }
 0x52c   :  { %1424 = vmatpush1.msra.mxu0 %v4607_v36  ;;  %1495 = vmatpush1.msra.mxu1 %v4608_v12  ;;  %v4626_v12 = vld [vmem:[#allocation41_spill] sm:$0xff] }
 0x52d   :  { %1425 = vmatprep.subr.mxu0 %v4609_v23  ;;  %1496 = vmatprep.subr.mxu1 %v4610_v24 }
 0x52e   :  { %1426 = vmatpush1.msra.mxu0 %v4611_v25  ;;  %1497 = vmatpush1.msra.mxu1 %v4612_v20  ;;  %v4622_v20 = vld [vmem:[#allocation5_spill] sm:$0xff] }
 0x52f   :  { %1427 = vmatprep.subr.mxu0 %v4613_v17  ;;  %1498 = vmatprep.subr.mxu1 %v4614_v19  ;;  %v4623_v17 = vld [vmem:[#allocation6_spill] sm:$0xff] }
 0x530   :  { %1428 = vmatpush1.msra.mxu0 %v4615_v16  ;;  %1499 = vmatpush1.msra.mxu1 %v4616_v15  ;;  %v4624_v16 = vld [vmem:[#allocation40_spill] sm:$0xff] }
 0x531   :  { %1429 = vmatprep.subr.mxu0 %v4617_v21  ;;  %1500 = vmatprep.subr.mxu1 %v4618_v13  ;;  %v4625_v21 = vld [vmem:[#allocation42_spill] sm:$0xff] }
 0x532   :  { %1430 = vmatpush1.msra.mxu0 %v4619_v30  ;;  %1463 = vmatprep.mubr.f32.mxu0 %v4620_v32 }
 0x533   :  { %1501 = vmatpush1.msra.mxu1 %v4621_v54  ;;  %1534 = vmatprep.mubr.f32.mxu1 %v4620_v32  ;;  %v4627_v32 = vld [vmem:[#allocation43_spill] sm:$0xff] }
 0x534   :  { %1569 = vmatprep.subr.mxu0 %v4622_v20  ;;  %1640 = vmatprep.subr.mxu1 %v4623_v17 }
 0x5d3   :  { %v1295_v19 = vpop.f32.mrf.mxu0  ;;  %v1366_v30 = vpop.f32.mrf.mxu1 }
 0x5d4   :  { %v1371_v25 = vadd.f32 %v1295_v19, %v4624_v16  ;;  %v1373_v36 = vadd.f32 %v1366_v30, %v4626_v12 }
 0x5d5   :  { %v1297_v15 = vpop.f32.mrf.mxu0  ;;  %v1368_v54 = vpop.f32.mrf.mxu1 }
 0x5d6   :  { %v2187_v24 = vmul.f32 -1.442695, %v1371_v25  ;;  %v1372_v23 = vadd.f32 %v1297_v15, %v4625_v21  ;;  %v2189_v62 = vmul.f32 -1.442695, %v1373_v36  ;;  %v1374_v22 = vadd.f32 %v1368_v54, %v4627_v32  ;;  %v1755_v32 = vld [vmem:[%s4369_s2 + $0x70] sm:$0xff] }
 0x5d8   :  { %2516 = vpow2.f32 %v2187_v24  ;;  %v2188_v13 = vmul.f32 -1.442695, %v1372_v23 }
 0x5da   :  { %2518 = vpow2.f32 %v2188_v13 }
 0x5db   :  { %2520 = vpow2.f32 %v2189_v62 }
 0x5dc   :  { %2522 = vtanh.f32 %v1374_v22 }
 0x5e5   :  { %v2517_v20 = vpop.eup %2516 }
 0x5e6   :  { %v1384_v33 = vadd.f32 1.0, %v2517_v20  ;;  %v4650_v20 = vld [vmem:[#allocation52_spill] sm:$0xff] }
 0x5e7   :  { %v2519_v17 = vpop.eup %2518 }
 0x5e8   :  { %2524 = vrcp.f32 %v1384_v33  ;;  %v1385_v19 = vadd.f32 1.0, %v2519_v17  ;;  %v2521_v25 = vpop.eup %2520  ;;  %v1754_v17 = vld [vmem:[%s4369_s2 + $0x68] sm:$0xff] }
 0x5e9   :  { %v2523_v16 = vpop.eup %2522  ;;  %v1386_v21 = vadd.f32 1.0, %v2521_v25  ;;  %v1752_v25 = vld [vmem:[%s4369_s2 + $0x58] sm:$0xff] }
 0x5ea   :  { %2526 = vrcp.f32 %v1385_v19  ;;  %v1753_v19 = vld [vmem:[%s4369_s2 + $0x60] sm:$0xff] }
 0x5eb   :  { %2528 = vrcp.f32 %v1386_v21  ;;  %v1747_v21 = vld [vmem:[%s4369_s2 + $0x30] sm:$0xff] }
 0x5f5   :  { %v2525_v24 = vpop.eup %2524 }
 0x5f6   :  { %v1395_v23 = vmul.f32 %v2525_v24, %v2523_v16  ;;  %v1751_v16 = vld [vmem:[%s4369_s2 + $0x50] sm:$0xff]  ;;  %v1750_v24 = vld [vmem:[%s4369_s2 + $0x48] sm:$0xff] }
 0x5f7   :  { %v2527_v15 = vpop.eup %2526 }
 0x5f8   :  { %v1394_v12 = vmul.f32 %v2527_v15, %v3932_v14  ;;  %v2529_v54 = vpop.eup %2528  ;;  %v1748_v15 = vld [vmem:[%s4369_s2 + $0x38] sm:$0xff] }
 0x5fa   :  { %v4010_v13 = vadd.f32 %v1395_v23, %v1394_v12  ;;  %v1749_v23 = vld [vmem:[%s4369_s2 + $0x40] sm:$0xff]  ;;  %v1746_v12 = vld [vmem:[%s4369_s2 + $0x28] sm:$0xff] }
 0x5fc   :  { %2530 = vtanh.f32 %v4010_v13 }
 0x609   :  { %v2531_v62 = vpop.eup %2530 }
 0x60a   :  { %v4013_v36 = vmul.f32 %v2531_v62, %v2529_v54  ;;  %v1744_v54 = vld [vmem:[%s4369_s2 + $0x18] sm:$0xff]  ;;  %v1743_v62 = vld [vmem:[%s4369_s2 + $0x10] sm:$0xff] }
 0x60c   :  { %1464 = vmatmul.mubr.f32.vlgmr.msra.gmra.mxu0 %v4013_v36  ;;  %1535 = vmatmul.mubr.f32.vlgmr.msra.gmra.mxu1 %v4013_v36 }
 0x60d   :  { %1570 = vmatpush1.msra.mxu0 %v3476_v40  ;;  %1641 = vmatpush1.msra.mxu1 %v3482_v9  ;;  %v4630_v40 = vld [vmem:[#allocation7_spill] sm:$0xff]  ;;  %v4631_v9 = vld [vmem:[#allocation8_spill] sm:$0xff] }
 0x60e   :  { %1571 = vmatprep.subr.mxu0 %v3488_v41  ;;  %1642 = vmatprep.subr.mxu1 %v3494_v42  ;;  %v4632_v41 = vld [vmem:[#allocation9_spill] sm:$0xff]  ;;  %v4633_v42 = vld [vmem:[#allocation10_spill] sm:$0xff] }
 0x60f   :  { %1572 = vmatpush1.msra.mxu0 %v3500_v18  ;;  %1643 = vmatpush1.msra.mxu1 %v3506_v3  ;;  %v4634_v18 = vld [vmem:[#allocation11_spill] sm:$0xff]  ;;  %v4635_v3 = vld [vmem:[#allocation12_spill] sm:$0xff] }
 0x610   :  { %1573 = vmatprep.subr.mxu0 %v3512_v10  ;;  %1644 = vmatprep.subr.mxu1 %v3518_v60  ;;  %v4636_v10 = vld [vmem:[#allocation13_spill] sm:$0xff]  ;;  %v4637_v60 = vld [vmem:[#allocation14_spill] sm:$0xff] }
 0x611   :  { %1574 = vmatpush1.msra.mxu0 %v3524_v0  ;;  %1645 = vmatpush1.msra.mxu1 %v3530_v61  ;;  %v4638_v0 = vld [vmem:[#allocation15_spill] sm:$0xff]  ;;  %v4639_v61 = vld [vmem:[#allocation16_spill] sm:$0xff] }
 0x612   :  { %1575 = vmatprep.subr.mxu0 %v3536_v11  ;;  %1646 = vmatprep.subr.mxu1 %v3542_v45  ;;  %v4640_v11 = vld [vmem:[#allocation17_spill] sm:$0xff]  ;;  %v4641_v45 = vld [vmem:[#allocation18_spill] sm:$0xff] }
 0x613   :  { %1576 = vmatpush1.msra.mxu0 %v3548_v2  ;;  %1647 = vmatpush1.msra.mxu1 %v3554_v1  ;;  %v4642_v2 = vld [vmem:[#allocation19_spill] sm:$0xff]  ;;  %v4643_v1 = vld [vmem:[#allocation20_spill] sm:$0xff] }
 0x614   :  { %1577 = vmatprep.subr.mxu0 %v3560_v63  ;;  %1648 = vmatprep.subr.mxu1 %v3566_v8  ;;  %v4644_v63 = vmov 0.0   ;;  %v4645_v8 = vld [vmem:[#allocation21_spill] sm:$0xff] }
 0x615   :  { %1578 = vmatpush1.msra.mxu0 %v3572_v59  ;;  %1649 = vmatpush1.msra.mxu1 %v3578_v4  ;;  %v1756_v59 = vld [vmem:[%s4369_s2 + $0x78] sm:$0xff] }
 0x616   :  { %1579 = vmatprep.subr.mxu0 %v3584_v5  ;;  %1650 = vmatprep.subr.mxu1 %v3590_v6  ;;  %v4646_v5 = vld [vmem:[#allocation44_spill] sm:$0xff] }
 0x617   :  { %1580 = vmatpush1.msra.mxu0 %v3596_v7  ;;  %1651 = vmatpush1.msra.mxu1 %v3602_v34 }
 0x618   :  { %1581 = vmatprep.subr.mxu0 %v4580_v26  ;;  %1652 = vmatprep.subr.mxu1 %v4581_v28 }
 0x619   :  { %1582 = vmatpush1.msra.mxu0 %v3620_v39  ;;  %1653 = vmatpush1.msra.mxu1 %v3626_v27  ;;  %v4628_v27 = vld [vmem:[#allocation25_spill] sm:$0xff]  ;;  %v4629_v39 = vld [vmem:[#allocation27_spill] sm:$0xff] }
 0x61a   :  { %1583 = vmatprep.subr.mxu0 %v3632_v37  ;;  %1654 = vmatprep.subr.mxu1 %v3638_v38  ;;  %v4647_v37 = vld [vmem:[#allocation46_spill] sm:$0xff] }
 0x61b   :  { %1584 = vmatpush1.msra.mxu0 %v3722_v29  ;;  %1655 = vmatpush1.msra.mxu1 %v3728_v31  ;;  %v4648_v29 = vld [vmem:[#allocation45_spill] sm:$0xff] }
 0x61c   :  { %1585 = vmatprep.subr.mxu0 %v3734_v35  ;;  %1656 = vmatprep.subr.mxu1 %v3740_v43 }
 0x61d   :  { %1586 = vmatpush1.msra.mxu0 %v3746_v44  ;;  %1657 = vmatpush1.msra.mxu1 %v3752_v46  ;;  %v4649_v44 = vld [vmem:[#allocation47_spill] sm:$0xff] }
 0x61e   :  { %1587 = vmatprep.subr.mxu0 %v3758_v47  ;;  %1658 = vmatprep.subr.mxu1 %v3764_v48 }
 0x61f   :  { %1588 = vmatpush1.msra.mxu0 %v3770_v49  ;;  %1659 = vmatpush1.msra.mxu1 %v3776_v50 }
 0x620   :  { %1589 = vmatprep.subr.mxu0 %v3782_v51  ;;  %1660 = vmatprep.subr.mxu1 %v3788_v52 }
 0x621   :  { %1590 = vmatpush1.msra.mxu0 %v3794_v53  ;;  %1661 = vmatpush1.msra.mxu1 %v3800_v55 }
 0x622   :  { %1591 = vmatprep.subr.mxu0 %v3806_v56  ;;  %1662 = vmatprep.subr.mxu1 %v3812_v57 }
 0x623   :  { %1592 = vmatpush1.msra.mxu0 %v3818_v58  ;;  %1663 = vmatpush1.msra.mxu1 %v4628_v27  ;;  %v1742_v27 = vld [vmem:[%s4369_s2 + $0x8] sm:$0xff] }
 0x624   :  { %1593 = vmatprep.subr.mxu0 %v4629_v39  ;;  %1664 = vmatprep.subr.mxu1 %v4630_v40  ;;  %v1741_v39 = vld [vmem:[%s4369_s2] sm:$0xff]  ;;  %v4651_v40 = vld [vmem:[#allocation4_spill] sm:$0xff] }
 0x625   :  { %1594 = vmatpush1.msra.mxu0 %v4631_v9  ;;  %1665 = vmatpush1.msra.mxu1 %v4632_v41  ;;  %v4652_v9 = vld [vmem:[#allocation2_spill] sm:$0xff] }
 0x626   :  { %1595 = vmatprep.subr.mxu0 %v4633_v42  ;;  %1666 = vmatprep.subr.mxu1 %v4634_v18  ;;  %v4653_v41 = vld [vmem:[#allocation26_spill] sm:$0xff] }
 0x627   :  { %1596 = vmatpush1.msra.mxu0 %v4635_v3  ;;  %1667 = vmatpush1.msra.mxu1 %v4636_v10  ;;  %v4654_v42 = vld [vmem:[#allocation22_spill] sm:$0xff]  ;;  %v1772_v3 = vld [vmem:[%s4369_s2 + $0xf8] sm:$0xff]  ;;  %v1771_v10 = vld [vmem:[%s4369_s2 + $0xf0] sm:$0xff] }
 0x628   :  { %1597 = vmatprep.subr.mxu0 %v4637_v60  ;;  %1668 = vmatprep.subr.mxu1 %v4638_v0  ;;  %v1773_v18 = vld [vmem:[%s4369_s2 + $0x100] sm:$0xff]  ;;  %v1768_v0 = vld [vmem:[%s4369_s2 + $0xd8] sm:$0xff] }
 0x629   :  { %1598 = vmatpush1.msra.mxu0 %v4639_v61  ;;  %1669 = vmatpush1.msra.mxu1 %v4640_v11  ;;  %v1769_v60 = vld [vmem:[%s4369_s2 + $0xe0] sm:$0xff]  ;;  %v1767_v61 = vld [vmem:[%s4369_s2 + $0xd0] sm:$0xff]  ;;  %v1766_v11 = vld [vmem:[%s4369_s2 + $0xc8] sm:$0xff] }
 0x62a   :  { %1599 = vmatprep.subr.mxu0 %v4641_v45  ;;  %1670 = vmatprep.subr.mxu1 %v4642_v2  ;;  %v1765_v45 = vld [vmem:[%s4369_s2 + $0xc0] sm:$0xff]  ;;  %v1764_v2 = vld [vmem:[%s4369_s2 + $0xb8] sm:$0xff] }
 0x62b   :  { %1600 = vmatpush1.msra.mxu0 %v4643_v1  ;;  %1633 = vmatprep.mubr.f32.mxu0 %v4644_v63  ;;  %v1763_v1 = vld [vmem:[%s4369_s2 + $0xb0] sm:$0xff] }
 0x62c   :  { %1671 = vmatpush1.msra.mxu1 %v4645_v8  ;;  %1704 = vmatprep.mubr.f32.mxu1 %v4644_v63  ;;  %v1762_v63 = vld [vmem:[%s4369_s2 + $0xa8] sm:$0xff]  ;;  %v1761_v8 = vld [vmem:[%s4369_s2 + $0xa0] sm:$0xff] }
 0x62d   :  { %2271 = vmatprep.subr.mxu0 %v1756_v59  ;;  %2315 = vmatprep.subr.mxu1 %v1773_v18 }
 0x6cc   :  { %v1465_v4 = vpop.f32.mrf.mxu0  ;;  %v1536_v28 = vpop.f32.mrf.mxu1 }
 0x6cd   :  { %v1541_v6 = vadd.f32 %v1465_v4, %v4646_v5  ;;  %v1543_v31 = vadd.f32 %v1536_v28, %v4648_v29  ;;  %v1759_v4 = vld [vmem:[%s4369_s2 + $0x90] sm:$0xff]  ;;  %v1758_v5 = vld [vmem:[%s4369_s2 + $0x88] sm:$0xff]  ;;  %v4235_v28 = vld [vmem:[%s4369_s2 + $0x158] sm:$0xff] }
 0x6ce   :  { %v1467_v7 = vpop.f32.mrf.mxu0  ;;  %v1538_v35 = vpop.f32.mrf.mxu1  ;;  %v4242_v29 = vld [vmem:[%s4369_s2 + $0x150] sm:$0xff] }
 0x6cf   :  { %v2190_v34 = vmul.f32 -1.442695, %v1541_v6  ;;  %v1542_v38 = vadd.f32 %v1467_v7, %v4647_v37  ;;  %v2192_v43 = vmul.f32 -1.442695, %v1543_v31  ;;  %v1544_v46 = vadd.f32 %v1538_v35, %v4649_v44  ;;  %v4194_v6 = vld [vmem:[%s4369_s2 + $0x188] sm:$0xff]  ;;  %v4199_v7 = vld [vmem:[%s4369_s2 + $0x180] sm:$0xff] }
 0x6d0   :  { %v4214_v37 = vld [vmem:[%s4369_s2 + $0x170] sm:$0xff]  ;;  %v4249_v31 = vld [vmem:[%s4369_s2 + $0x148] sm:$0xff]  ;;  %v4256_v35 = vld [vmem:[%s4369_s2 + $0x140] sm:$0xff] }
 0x6d1   :  { %2532 = vpow2.f32 %v2190_v34  ;;  %v2191_v26 = vmul.f32 -1.442695, %v1542_v38  ;;  %v4207_v34 = vld [vmem:[%s4369_s2 + $0x178] sm:$0xff]  ;;  %v4221_v38 = vld [vmem:[%s4369_s2 + $0x168] sm:$0xff]  ;;  %v4270_v44 = vld [vmem:[%s4369_s2 + $0x130] sm:$0xff] }
 0x6d3   :  { %2534 = vpow2.f32 %v2191_v26  ;;  %v4228_v26 = vld [vmem:[%s4369_s2 + $0x160] sm:$0xff] }
 0x6d4   :  { %2536 = vpow2.f32 %v2192_v43  ;;  %v4263_v43 = vld [vmem:[%s4369_s2 + $0x138] sm:$0xff] }
 0x6d5   :  { %2538 = vtanh.f32 %v1544_v46 }
 0x6de   :  { %v2533_v47 = vpop.eup %2532 }
 0x6df   :  { %v1554_v48 = vadd.f32 1.0, %v2533_v47  ;;  %v4655_v47 = vld [vmem:[#allocation48_spill] sm:$0xff] }
 0x6e0   :  { %v2535_v49 = vpop.eup %2534 }
 0x6e1   :  { %2540 = vrcp.f32 %v1554_v48  ;;  %v1555_v50 = vadd.f32 1.0, %v2535_v49  ;;  %v2537_v51 = vpop.eup %2536 }
 0x6e2   :  { %v2539_v52 = vpop.eup %2538  ;;  %v1556_v57 = vadd.f32 1.0, %v2537_v51  ;;  %v4656_v51 = vld [vmem:[#allocation50_spill] sm:$0xff] }
 0x6e3   :  { %2542 = vrcp.f32 %v1555_v50 }
 0x6e4   :  { %2544 = vrcp.f32 %v1556_v57 }
 0x6ee   :  { %v2541_v53 = vpop.eup %2540 }
 0x6ef   :  { %v1565_v55 = vmul.f32 %v2541_v53, %v2539_v52 }
 0x6f0   :  { %v2543_v56 = vpop.eup %2542 }
 0x6f1   :  { %v1564_v58 = vmul.f32 %v2543_v56, %v4010_v13  ;;  %v2545_v33 = vpop.eup %2544  ;;  %v1745_v13 = vld [vmem:[%s4369_s2 + $0x20] sm:$0xff]  ;;  %v4657_v56 = vld [vmem:[#allocation49_spill] sm:$0xff] }
 0x6f3   :  { %v4089_v14 = vadd.f32 %v1565_v55, %v1564_v58 }
 0x6f5   :  { %2546 = vtanh.f32 %v4089_v14 }
 0x702   :  { %v2547_v22 = vpop.eup %2546 }
 0x703   :  { %v1568_v30 = vmul.f32 %v2547_v22, %v2545_v33  ;;  %v4658_v22 = vld [vmem:[#allocation51_spill] sm:$0xff] }
 0x705   :  { %1634 = vmatmul.mubr.f32.vlgmr.msra.gmra.mxu0 %v1568_v30  ;;  %1705 = vmatmul.mubr.f32.vlgmr.msra.gmra.mxu1 %v1568_v30 }
 0x706   :  { %2272 = vmatpush3.msra.mxu0 %v1756_v59  ;;  %2303 = vmatprep.mubr.f32.mxu0 %v4650_v20  ;;  %v1760_v59 = vld [vmem:[%s4369_s2 + $0x98] sm:$0xff] }
 0x707   :  { %2273 = vmatprep.subr.mxu0 %v1755_v32  ;;  %2316 = vmatpush3.msra.mxu1 %v1773_v18 }
 0x708   :  { %2274 = vmatpush3.msra.mxu0 %v1755_v32  ;;  %2317 = vmatprep.subr.mxu1 %v1772_v3 }
 0x709   :  { %2275 = vmatprep.subr.mxu0 %v1754_v17  ;;  %2318 = vmatpush3.msra.mxu1 %v1772_v3 }
 0x70a   :  { %2276 = vmatpush3.msra.mxu0 %v1754_v17  ;;  %2319 = vmatprep.subr.mxu1 %v1771_v10 }
 0x70b   :  { %2277 = vmatprep.subr.mxu0 %v1753_v19  ;;  %2320 = vmatpush3.msra.mxu1 %v1771_v10 }
 0x70c   :  { %2278 = vmatpush3.msra.mxu0 %v1753_v19 }
 0x70d   :  { %2279 = vmatprep.subr.mxu0 %v1752_v25 }
 0x70e   :  { %2280 = vmatpush3.msra.mxu0 %v1752_v25  ;;  %v4283_v25 = vld [vmem:[%s4369_s2 + $0x80] ss:$0 sm:$0xff] }
 0x70f   :  { %2281 = vmatprep.subr.mxu0 %v1751_v16 }
 0x710   :  { %2282 = vmatpush3.msra.mxu0 %v1751_v16 }
 0x711   :  { %2283 = vmatprep.subr.mxu0 %v1750_v24 }
 0x712   :  { %2284 = vmatpush3.msra.mxu0 %v1750_v24 }
 0x713   :  { %2285 = vmatprep.subr.mxu0 %v1749_v23 }
 0x714   :  { %2286 = vmatpush3.msra.mxu0 %v1749_v23 }
 0x715   :  { %2287 = vmatprep.subr.mxu0 %v1748_v15 }
 0x716   :  { %2288 = vmatpush3.msra.mxu0 %v1748_v15 }
 0x717   :  { %2289 = vmatprep.subr.mxu0 %v1747_v21 }
 0x718   :  { %2290 = vmatpush3.msra.mxu0 %v1747_v21 }
 0x719   :  { %2291 = vmatprep.subr.mxu0 %v1746_v12 }
 0x71a   :  { %2292 = vmatpush3.msra.mxu0 %v1746_v12 }
 0x71b   :  { %2293 = vmatprep.subr.mxu0 %v1745_v13 }
 0x71c   :  { %2294 = vmatpush3.msra.mxu0 %v1745_v13 }
 0x71d   :  { %2295 = vmatprep.subr.mxu0 %v1744_v54 }
 0x71e   :  { %2296 = vmatpush3.msra.mxu0 %v1744_v54 }
 0x71f   :  { %2297 = vmatprep.subr.mxu0 %v1743_v62 }
 0x720   :  { %2298 = vmatpush3.msra.mxu0 %v1743_v62 }
 0x721   :  { %2299 = vmatprep.subr.mxu0 %v1742_v27 }
 0x722   :  { %2300 = vmatpush3.msra.mxu0 %v1742_v27 }
 0x723   :  { %2301 = vmatprep.subr.mxu0 %v1741_v39 }
 0x724   :  { %2302 = vmatpush3.msra.mxu0 %v1741_v39 }
 0x725   :  { %2304 = vmatmul.mubr.f32.vlgmr.msra.gmra.mxu0 %v4651_v40  ;;  %2359 = vmatprep.subr.mxu0 %v4194_v6 }
 0x726   :  { %2306 = vmatprep.mubr.f32.mxu0 %v4652_v9  ;;  %2360 = vmatpush3.msra.mxu0 %v4194_v6 }
 0x727   :  { %2361 = vmatprep.subr.mxu0 %v4199_v7 }
 0x728   :  { %2362 = vmatpush3.msra.mxu0 %v4199_v7 }
 0x729   :  { %2307 = vmatmul.mubr.f32.gmra.mxu0 %v4653_v41  ;;  %2363 = vmatprep.subr.mxu0 %v4207_v34 }
 0x72a   :  { %2309 = vmatprep.mubr.f32.mxu0 %v4654_v42  ;;  %2364 = vmatpush3.msra.mxu0 %v4207_v34 }
 0x72b   :  { %2365 = vmatprep.subr.mxu0 %v4214_v37 }
 0x72c   :  { %2366 = vmatpush3.msra.mxu0 %v4214_v37 }
 0x72d   :  { %2310 = vmatmul.mubr.f32.gmra.mxu0 %v4013_v36  ;;  %v1770_v36 = vld [vmem:[%s4369_s2 + $0xe8] sm:$0xff]  ;;  %2367 = vmatprep.subr.mxu0 %v4221_v38 }
 0x72e   :  { %2312 = vmatprep.mubr.f32.mxu0 %v1568_v30  ;;  %2321 = vmatprep.subr.mxu1 %v1770_v36 }
 0x72f   :  { %2322 = vmatpush3.msra.mxu1 %v1770_v36  ;;  %2368 = vmatpush3.msra.mxu0 %v4221_v38 }
 0x730   :  { %2323 = vmatprep.subr.mxu1 %v1769_v60  ;;  %2369 = vmatprep.subr.mxu0 %v4228_v26 }
 0x731   :  { %2324 = vmatpush3.msra.mxu1 %v1769_v60  ;;  %2370 = vmatpush3.msra.mxu0 %v4228_v26 }
 0x732   :  { %2325 = vmatprep.subr.mxu1 %v1768_v0  ;;  %2371 = vmatprep.subr.mxu0 %v4235_v28 }
 0x733   :  { %2326 = vmatpush3.msra.mxu1 %v1768_v0  ;;  %2372 = vmatpush3.msra.mxu0 %v4235_v28 }
 0x734   :  { %2327 = vmatprep.subr.mxu1 %v1767_v61  ;;  %2373 = vmatprep.subr.mxu0 %v4242_v29 }
 0x735   :  { %2328 = vmatpush3.msra.mxu1 %v1767_v61  ;;  %2374 = vmatpush3.msra.mxu0 %v4242_v29 }
 0x736   :  { %2329 = vmatprep.subr.mxu1 %v1766_v11  ;;  %2375 = vmatprep.subr.mxu0 %v4249_v31 }
 0x737   :  { %2330 = vmatpush3.msra.mxu1 %v1766_v11  ;;  %2376 = vmatpush3.msra.mxu0 %v4249_v31 }
 0x738   :  { %2331 = vmatprep.subr.mxu1 %v1765_v45  ;;  %2377 = vmatprep.subr.mxu0 %v4256_v35 }
 0x739   :  { %2332 = vmatpush3.msra.mxu1 %v1765_v45  ;;  %2378 = vmatpush3.msra.mxu0 %v4256_v35 }
 0x73a   :  { %2333 = vmatprep.subr.mxu1 %v1764_v2  ;;  %2379 = vmatprep.subr.mxu0 %v4263_v43 }
 0x73b   :  { %2334 = vmatpush3.msra.mxu1 %v1764_v2  ;;  %2380 = vmatpush3.msra.mxu0 %v4263_v43 }
 0x73c   :  { %2335 = vmatprep.subr.mxu1 %v1763_v1  ;;  %2381 = vmatprep.subr.mxu0 %v4270_v44 }
 0x73d   :  { %2336 = vmatpush3.msra.mxu1 %v1763_v1  ;;  %2382 = vmatpush3.msra.mxu0 %v4270_v44 }
 0x73e   :  { %2337 = vmatprep.subr.mxu1 %v1762_v63 }
 0x73f   :  { %2338 = vmatpush3.msra.mxu1 %v1762_v63 }
 0x740   :  { %2339 = vmatprep.subr.mxu1 %v1761_v8 }
 0x741   :  { %2340 = vmatpush3.msra.mxu1 %v1761_v8 }
 0x742   :  { %2341 = vmatprep.subr.mxu1 %v1760_v59 }
 0x743   :  { %2342 = vmatpush3.msra.mxu1 %v1760_v59  ;;  %v1778_v59 = vld [vmem:[%s4369_s2 + $0x128] sm:$0xff] }
 0x744   :  { %2343 = vmatprep.subr.mxu1 %v1759_v4  ;;  %2383 = vmatprep.subr.mxu0 %v1778_v59 }
 0x745   :  { %2344 = vmatpush3.msra.mxu1 %v1759_v4  ;;  %2384 = vmatpush3.msra.mxu0 %v1778_v59  ;;  %v1777_v4 = vld [vmem:[%s4369_s2 + $0x120] sm:$0xff] }
 0x746   :  { %2345 = vmatprep.subr.mxu1 %v1758_v5  ;;  %2385 = vmatprep.subr.mxu0 %v1777_v4 }
 0x747   :  { %2346 = vmatpush3.msra.mxu1 %v1758_v5  ;;  %2386 = vmatpush3.msra.mxu0 %v1777_v4  ;;  %v1776_v5 = vld [vmem:[%s4369_s2 + $0x118] sm:$0xff] }
 0x748   :  { %2403 = vmatprep.subr.mxu1 %v4194_v6  ;;  %2387 = vmatprep.subr.mxu0 %v1776_v5 }
 0x749   :  { %2388 = vmatpush3.msra.mxu0 %v1776_v5 }
 0x7c5   :  { %v1635_v46 = vpop.f32.mrf.mxu0  ;;  %v1706_v55 = vpop.f32.mrf.mxu1 }
 0x7c6   :  { %v1711_v48 = vadd.f32 %v1635_v46, %v4655_v47  ;;  %v1713_v57 = vadd.f32 %v1706_v55, %v4657_v56 }
 0x7c7   :  { %v1637_v49 = vpop.f32.mrf.mxu0  ;;  %v1708_v58 = vpop.f32.mrf.mxu1 }
 0x7c8   :  { %v2193_v50 = vmul.f32 -1.442695, %v1711_v48  ;;  %v1712_v52 = vadd.f32 %v1637_v49, %v4656_v51  ;;  %v2195_v33 = vmul.f32 -1.442695, %v1713_v57  ;;  %v1714_v30 = vadd.f32 %v1708_v58, %v4658_v22 }
 0x7ca   :  { %2548 = vpow2.f32 %v2193_v50  ;;  %v2194_v53 = vmul.f32 -1.442695, %v1712_v52 }
 0x7cc   :  { %2550 = vpow2.f32 %v2194_v53 }
 0x7cd   :  { %2552 = vpow2.f32 %v2195_v33 }
 0x7ce   :  { %2554 = vtanh.f32 %v1714_v30  ;;  %v2198_v30 = vld [vmem:[%s4369_s2 + $0x190] ss:$0 sm:$0xff] }
 0x7d7   :  { %v2549_v32 = vpop.eup %2548 }
 0x7d8   :  { %v1724_v20 = vadd.f32 1.0, %v2549_v32 }
 0x7d9   :  { %v2551_v17 = vpop.eup %2550 }
 0x7da   :  { %2556 = vrcp.f32 %v1724_v20  ;;  %v1725_v19 = vadd.f32 1.0, %v2551_v17  ;;  %v2553_v16 = vpop.eup %2552 }
 0x7db   :  { %v2555_v23 = vpop.eup %2554  ;;  %v1726_v27 = vadd.f32 1.0, %v2553_v16 }
 0x7dc   :  { %2558 = vrcp.f32 %v1725_v19 }
 0x7dd   :  { %2560 = vrcp.f32 %v1726_v27 }
 0x7e5   :  { %v2305_v24 = vpop.f32.mrf.mxu0 }
 0x7e6   :  { %v1868_v21 = vadd.f32 %v2305_v24, %v4283_v25 }
 0x7e7   :  { %v2557_v15 = vpop.eup %2556  ;;  %v1862_v12 = vpop.f32.mrf.mxu0 }
 0x7e8   :  { %v1735_v13 = vmul.f32 %v2557_v15, %v2555_v23  ;;  %v1863_v54 = vadd.f32 %v4283_v25, %v1862_v12  ;;  %v1902_v41 = vmax.f32 %v1868_v21, 0.0 }
 0x7e9   :  { %v2559_v62 = vpop.eup %2558  ;;  %v2308_v39 = vpop.f32.mrf.mxu0 }
 0x7ea   :  { %v1734_v40 = vmul.f32 %v2559_v62, %v4089_v14  ;;  %v1901_v9 = vmax.f32 %v1863_v54, 0.0  ;;  %v1878_v42 = vadd.f32 %v2308_v39, %v4283_v25  ;;  %v2561_v1 = vpop.eup %2560 }
 0x7eb   :  { %v1872_v18 = vpop.f32.mrf.mxu0 }
 0x7ec   :  { %v1736_v3 = vadd.f32 %v1735_v13, %v1734_v40  ;;  %v1873_v10 = vadd.f32 %v4283_v25, %v1872_v18  ;;  %2347 = vmatprep.mubr.f32.mxu1 %v1901_v9  ;;  %v1904_v14 = vmax.f32 %v1878_v42, 0.0 }
 0x7ed   :  { %v2311_v36 = vpop.f32.mrf.mxu0  ;;  %2348 = vmatmul.mubr.f32.vlgmr.msra.gmra.mxu1 %v1902_v41 }
 0x7ee   :  { %1740 = vst [vmem:[%s4370_s7] sm:$0xff] %v1736_v3  ;;  %v1903_v60 = vmax.f32 %v1873_v10, 0.0  ;;  %2562 = vtanh.f32 %v1736_v3  ;;  %2419 = vmatpush3.msra.mxu1 %v4194_v6  ;;  %v1888_v0 = vadd.f32 %v2311_v36, %v4283_v25  ;;  %v1775_v6 = vld [vmem:[%s4369_s2 + $0x110] sm:$0xff] }
 0x7ef   :  { %v1882_v61 = vpop.f32.mrf.mxu0  ;;  %2404 = vmatprep.subr.mxu1 %v4199_v7  ;;  %2389 = vmatprep.subr.mxu0 %v1775_v6 }
 0x7f0   :  { %v1883_v11 = vadd.f32 %v4283_v25, %v1882_v61  ;;  %2350 = vmatprep.mubr.f32.mxu1 %v1903_v60  ;;  %2420 = vmatpush3.msra.mxu1 %v4199_v7  ;;  %v1906_v2 = vmax.f32 %v1888_v0, 0.0  ;;  %v2197_v7 = vld [vmem:[%s4369_s2 + $0x108] ss:$0 sm:$0xff] }
 0x7f1   :  { %2351 = vmatmul.mubr.f32.gmra.mxu1 %v1904_v14  ;;  %2405 = vmatprep.subr.mxu1 %v4207_v34 }
 0x7f2   :  { %v1905_v45 = vmax.f32 %v1883_v11, 0.0  ;;  %2421 = vmatpush3.msra.mxu1 %v4207_v34  ;;  %2390 = vmatpush3.msra.mxu0 %v1775_v6 }
 0x7f3   :  { %2406 = vmatprep.subr.mxu1 %v4214_v37 }
 0x7f4   :  { %2353 = vmatprep.mubr.f32.mxu1 %v1905_v45  ;;  %2422 = vmatpush3.msra.mxu1 %v4214_v37 }
 0x7f5   :  { %2354 = vmatmul.mubr.f32.gmra.mxu1 %v1906_v2  ;;  %2407 = vmatprep.subr.mxu1 %v4221_v38 }
 0x7f6   :  { %2423 = vmatpush3.msra.mxu1 %v4221_v38 }
 0x7f7   :  { %2408 = vmatprep.subr.mxu1 %v4228_v26 }
 0x7f8   :  { %2424 = vmatpush3.msra.mxu1 %v4228_v26 }
 0x7f9   :  { %2409 = vmatprep.subr.mxu1 %v4235_v28 }
 0x7fa   :  { %2425 = vmatpush3.msra.mxu1 %v4235_v28 }
 0x7fb   :  { %v2563_v63 = vpop.eup %2562  ;;  %2410 = vmatprep.subr.mxu1 %v4242_v29 }
 0x7fc   :  { %v1738_v8 = vmul.f32 %v2563_v63, %v2561_v1  ;;  %2426 = vmatpush3.msra.mxu1 %v4242_v29 }
 0x7fd   :  { %2411 = vmatprep.subr.mxu1 %v4249_v31 }
 0x7fe   :  { %1739 = vst [vmem:[%s4371_s6] sm:$0xff] %v1738_v8  ;;  %2313 = vmatmul.mubr.f32.gmra.mxu0 %v1738_v8  ;;  %2427 = vmatpush3.msra.mxu1 %v4249_v31 }
 0x7ff   :  { %2412 = vmatprep.subr.mxu1 %v4256_v35 }
 0x800   :  { %2428 = vmatpush3.msra.mxu1 %v4256_v35 }
 0x801   :  { %2413 = vmatprep.subr.mxu1 %v4263_v43 }
 0x802   :  { %2429 = vmatpush3.msra.mxu1 %v4263_v43 }
 0x803   :  { %2414 = vmatprep.subr.mxu1 %v4270_v44 }
 0x804   :  { %2430 = vmatpush3.msra.mxu1 %v4270_v44 }
 0x805   :  { %2415 = vmatprep.subr.mxu1 %v1778_v59 }
 0x806   :  { %2431 = vmatpush3.msra.mxu1 %v1778_v59 }
 0x807   :  { %2416 = vmatprep.subr.mxu1 %v1777_v4 }
 0x808   :  { %2432 = vmatpush3.msra.mxu1 %v1777_v4 }
 0x809   :  { %2417 = vmatprep.subr.mxu1 %v1776_v5 }
 0x80a   :  { %2433 = vmatpush3.msra.mxu1 %v1776_v5 }
 0x80b   :  { %2418 = vmatprep.subr.mxu1 %v1775_v6 }
 0x80c   :  { %2434 = vmatpush3.msra.mxu1 %v1775_v6 }
 0x8ad   :  { %v2349_v34 = vpop.f32.mrf.mxu1 }
 0x8ae   :  { %v1985_v37 = vadd.f32 %v2349_v34, %v2197_v7 }
 0x8af   :  { %v1979_v38 = vpop.f32.mrf.mxu1 }
 0x8b0   :  { %v1980_v26 = vadd.f32 %v2197_v7, %v1979_v38  ;;  %v2019_v31 = vmax.f32 %v1985_v37, 0.0 }
 0x8b1   :  { %v2352_v28 = vpop.f32.mrf.mxu1 }
 0x8b2   :  { %v2018_v29 = vmax.f32 %v1980_v26, 0.0  ;;  %v1995_v35 = vadd.f32 %v2352_v28, %v2197_v7 }
 0x8b3   :  { %v1989_v43 = vpop.f32.mrf.mxu1 }
 0x8b4   :  { %v1990_v44 = vadd.f32 %v2197_v7, %v1989_v43  ;;  %2391 = vmatprep.mubr.f32.mxu0 %v2018_v29  ;;  %v2021_v47 = vmax.f32 %v1995_v35, 0.0 }
 0x8b5   :  { %2392 = vmatmul.mubr.f32.vlgmr.msra.gmra.mxu0 %v2019_v31  ;;  %v2355_v48 = vpop.f32.mrf.mxu1 }
 0x8b6   :  { %v2020_v46 = vmax.f32 %v1990_v44, 0.0  ;;  %v2005_v57 = vadd.f32 %v2355_v48, %v2197_v7 }
 0x8b7   :  { %v1999_v49 = vpop.f32.mrf.mxu1 }
 0x8b8   :  { %2394 = vmatprep.mubr.f32.mxu0 %v2020_v46  ;;  %v2000_v53 = vadd.f32 %v2197_v7, %v1999_v49  ;;  %v2023_v22 = vmax.f32 %v2005_v57, 0.0 }
 0x8b9   :  { %2395 = vmatmul.mubr.f32.gmra.mxu0 %v2021_v47 }
 0x8ba   :  { %v2022_v33 = vmax.f32 %v2000_v53, 0.0 }
 0x8be   :  { %v2314_v50 = vpop.f32.mrf.mxu0 }
 0x8bf   :  { %v1898_v51 = vadd.f32 %v2314_v50, %v4283_v25 }
 0x8c0   :  { %v1892_v52 = vpop.f32.mrf.mxu0 }
 0x8c1   :  { %v1893_v55 = vadd.f32 %v4283_v25, %v1892_v52  ;;  %v1908_v58 = vmax.f32 %v1898_v51, 0.0 }
 0x8c3   :  { %v1907_v56 = vmax.f32 %v1893_v55, 0.0 }
 0x8c5   :  { %2356 = vmatprep.mubr.f32.mxu1 %v1907_v56 }
 0x8c6   :  { %2357 = vmatmul.mubr.f32.gmra.mxu1 %v1908_v58 }
 0x8c7   :  { %2397 = vmatprep.mubr.f32.mxu1 %v2022_v33 }
 0x8ca   :  { %2398 = vmatmul.mubr.f32.vlgmr.msra.gmra.mxu1 %v2023_v22 }
 0x975   :  { %v2393_v32 = vpop.f32.mrf.mxu0 }
 0x976   :  { %v2102_v20 = vadd.f32 %v2393_v32, %v2198_v30 }
 0x977   :  { %v2096_v17 = vpop.f32.mrf.mxu0 }
 0x978   :  { %2136 = vst [vmem:[%s4372_s5 + $0x8] sm:$0xff] %v2102_v20  ;;  %v2097_v19 = vadd.f32 %v2198_v30, %v2096_v17 }
 0x979   :  { %v2396_v25 = vpop.f32.mrf.mxu0 }
 0x97a   :  { %2135 = vst [vmem:[%s4372_s5] sm:$0xff] %v2097_v19  ;;  %v2112_v16 = vadd.f32 %v2396_v25, %v2198_v30 }
 0x97b   :  { %v2106_v24 = vpop.f32.mrf.mxu0 }
 0x97c   :  { %2138 = vst [vmem:[%s4372_s5 + $0x18] sm:$0xff] %v2112_v16  ;;  %v2107_v23 = vadd.f32 %v2198_v30, %v2106_v24 }
 0x97e   :  { %2137 = vst [vmem:[%s4372_s5 + $0x10] sm:$0xff] %v2107_v23 }
 0x986   :  { %v2358_v15 = vpop.f32.mrf.mxu1 }
 0x987   :  { %v2015_v21 = vadd.f32 %v2358_v15, %v2197_v7 }
 0x988   :  { %v2009_v12 = vpop.f32.mrf.mxu1 }
 0x989   :  { %v2010_v13 = vadd.f32 %v2197_v7, %v2009_v12  ;;  %v2025_v39 = vmax.f32 %v2015_v21, 0.0 }
 0x98a   :  { %v2399_v54 = vpop.f32.mrf.mxu1 }
 0x98b   :  { %v2024_v62 = vmax.f32 %v2010_v13, 0.0  ;;  %v2122_v27 = vadd.f32 %v2399_v54, %v2198_v30 }
 0x98c   :  { %v2116_v40 = vpop.f32.mrf.mxu1 }
 0x98d   :  { %2140 = vst [vmem:[%s4372_s5 + $0x28] sm:$0xff] %v2122_v27  ;;  %v2117_v9 = vadd.f32 %v2198_v30, %v2116_v40  ;;  %2400 = vmatprep.mubr.f32.mxu1 %v2024_v62 }
 0x98e   :  { %2401 = vmatmul.mubr.f32.gmra.mxu1 %v2025_v39 }
 0x98f   :  { %2139 = vst [vmem:[%s4372_s5 + $0x20] sm:$0xff] %v2117_v9 }
 0xa4e   :  { %v2402_v41 = vpop.f32.mrf.mxu1 }
 0xa4f   :  { %v2132_v42 = vadd.f32 %v2402_v41, %v2198_v30 }
 0xa50   :  { %v2126_v18 = vpop.f32.mrf.mxu1 }
 0xa51   :  { %2142 = vst [vmem:[%s4372_s5 + $0x38] sm:$0xff] %v2132_v42  ;;  %v2127_v3 = vadd.f32 %v2198_v30, %v2126_v18 }
 0xa53   :  { %2141 = vst [vmem:[%s4372_s5 + $0x30] sm:$0xff] %v2127_v3 }

</bundles_post_ra>
